<compile_context>
chip_gen: v7x
topology: tpu7x:2x2x1
jax: 0.10.0
libtpu: 0.0.40
codegen_flags: <defaults>
</compile_context>

<pallas_src>
import functools

import jax
import jax.numpy as jnp
from jax import lax
from jax.experimental import pallas as pl
from jax.experimental.pallas import tpu as pltpu


def _gru_kernel(gi_ref, h0_ref, whh_ref, bhn_ref, out_ref, h_scr):
    """One (batch-block, time-chunk) grid step of the GRU.

    gi_ref : (Tc, 3, Bb, H)  precomputed x@W_ih^T + b_ih (+ b_hh_{r,z} folded)
    h0_ref : (1, Bb, H)      initial hidden state for this batch block
    whh_ref: (3, H, H)       per-gate W_hh^T (r, z, n)
    bhn_ref: (1, H)          b_hh_n (must stay inside the recurrence)
    out_ref: (Tc, Bb, H)     outputs for this chunk
    h_scr  : (Bb, H) f32     hidden-state carry across time chunks
    """
    c = pl.program_id(1)  # time-chunk index (sequential "arbitrary" axis)

    @pl.when(c == 0)
    def _():
        h_scr[...] = h0_ref[0].astype(jnp.float32)

    # Hoist constant loads out of the unrolled time loop.
    w_r = whh_ref[0]          # (H, H)
    w_z = whh_ref[1]
    w_n = whh_ref[2]
    b_n = bhn_ref[...]        # (1, H)
    n_steps = out_ref.shape[0]

    def step(t, h):
        g = gi_ref[t].astype(jnp.float32)                    # (3, Bb, H)
        h_r = jnp.dot(h, w_r, preferred_element_type=jnp.float32)
        h_z = jnp.dot(h, w_z, preferred_element_type=jnp.float32)
        h_n = jnp.dot(h, w_n, preferred_element_type=jnp.float32) + b_n
        r = jax.nn.sigmoid(g[0] + h_r)
        z = jax.nn.sigmoid(g[1] + h_z)
        n = jnp.tanh(g[2] + r * h_n)
        h_new = (1.0 - z) * n + z * h
        out_ref[t] = h_new.astype(out_ref.dtype)
        return h_new

    h_scr[...] = lax.fori_loop(0, n_steps, step, h_scr[...], unroll=True)


def _time_chunk(T, cap):
    cap = max(1, min(T, cap))
    for d in range(cap, 0, -1):
        if T % d == 0:
            return d
    return 1


def _batch_chunk(B, cap):
    cap = max(1, min(B, cap))
    # Batch is the second-minor dim of the kernel tiles: the block must be a
    # multiple of 8 (sublane) or cover the whole batch.
    for d in range(cap, 0, -1):
        if B % d == 0 and (d % 8 == 0 or d == B):
            return d
    return B


@functools.partial(jax.jit, static_argnames=("time_block", "batch_block"))
def gru_forward_pallas(x, h0, w_ih, w_hh, b_ih, b_hh, *,
                       time_block=8, batch_block=8):
    """Full GRU sequence.  x: (T, B, H), h0: (1, B, H).  Returns (T, B, H)."""
    T, B, H = x.shape
    tc = _time_chunk(T, time_block)
    bb = _batch_chunk(B, batch_block)
    f32 = jnp.float32
    hi = lax.Precision.HIGHEST  # true-f32 XLA GEMM (matches f32 Mosaic matmul)

    # ---- Hoisted input projection: one big GEMM over all T*B rows ----------
    wih_t = jnp.transpose(w_ih.astype(f32))                       # (H, 3H)
    gi = jnp.dot(x.reshape(T * B, H).astype(f32), wih_t,
                 precision=hi, preferred_element_type=f32)        # (T*B, 3H)
    # Fold b_ih fully and b_hh for the r/z gates; b_hh_n must stay in-loop.
    bias = b_ih.astype(f32) + jnp.concatenate(
        [b_hh[:2 * H].astype(f32), jnp.zeros((H,), f32)])
    gi = gi + bias
    gi = gi.reshape(T, B, 3, H).transpose(0, 2, 1, 3)             # (T, 3, B, H)

    # Recurrent weights, gate-major: whh_g[g] = W_hh_g^T  (r, z, n).
    whh_g = jnp.transpose(w_hh.astype(f32).reshape(3, H, H), (0, 2, 1))
    bhh_n = b_hh[2 * H:].astype(f32).reshape(1, H)

    nb, nc = B // bb, T // tc

    out = pl.pallas_call(
        _gru_kernel,
        out_shape=jax.ShapeDtypeStruct((T, B, H), x.dtype),
        grid_spec=pltpu.PrefetchScalarGridSpec(
            num_scalar_prefetch=0,
            grid=(nb, nc),
            in_specs=[
                pl.BlockSpec((tc, 3, bb, H), lambda b, c: (c, 0, b, 0)),  # gi
                pl.BlockSpec((1, bb, H), lambda b, c: (0, b, 0)),         # h0
                pl.BlockSpec((3, H, H), lambda b, c: (0, 0, 0)),          # W_hh^T
                pl.BlockSpec((1, H), lambda b, c: (0, 0)),                # b_hh_n
            ],
            out_specs=pl.BlockSpec((tc, bb, H), lambda b, c: (c, b, 0)),
            scratch_shapes=[pltpu.VMEM((bb, H), jnp.float32)],
        ),
        compiler_params=pltpu.CompilerParams(
            # batch blocks independent (megacore-shardable); time is sequential
            dimension_semantics=("parallel", "arbitrary"),
            vmem_limit_bytes=32 * 1024 * 1024,
        ),
    )(gi, h0.astype(f32), whh_g, bhh_n)
    return out


def gru_forward_ref(x, h0, w_ih, w_hh, b_ih, b_hh):
    """Pure-JAX reference matching torch.nn.GRU semantics (true-f32 matmuls)."""
    H = x.shape[-1]
    hi = lax.Precision.HIGHEST

    def step(h, xt):
        gi = jnp.dot(xt, w_ih.T, precision=hi) + b_ih
        gh = jnp.dot(h, w_hh.T, precision=hi) + b_hh
        i_r, i_z, i_n = gi[:, :H], gi[:, H:2 * H], gi[:, 2 * H:]
        h_r, h_z, h_n = gh[:, :H], gh[:, H:2 * H], gh[:, 2 * H:]
        r = jax.nn.sigmoid(i_r + h_r)
        z = jax.nn.sigmoid(i_z + h_z)
        n = jnp.tanh(i_n + r * h_n)
        h_new = (1.0 - z) * n + z * h
        return h_new, h_new

    _, ys = lax.scan(step, h0[0], x)
    return ys


class Decoder:
    """Mirrors the PyTorch Decoder's stateful behavior (self.last_hidden)."""

    def __init__(self, hidden_size, params, *, time_block=8, batch_block=8):
        self.hidden_size = hidden_size
        self.params = params              # (w_ih, w_hh, b_ih, b_hh)
        self.time_block = time_block
        self.batch_block = batch_block
        self.last_hidden = None

    def __call__(self, x, hidden=None):
        T, B, H = x.shape
        if hidden is None:
            h0 = self.last_hidden
            if h0 is None:
                h0 = jnp.zeros((1, B, H), x.dtype)
        else:
            h0 = hidden
        out = gru_forward_pallas(x, h0, *self.params,
                                 time_block=self.time_block,
                                 batch_block=self.batch_block)
        # new hidden = last output time-step (num_layers=1)
        self.last_hidden = out[-1:]
        return out


if __name__ == "__main__":
    T, B, H = 16, 16, 32     # seq_len, batch, hidden_size
    key = jax.random.PRNGKey(0)
    kx, k1, k2, k3, k4 = jax.random.split(key, 5)

    # PyTorch-style uniform(-1/sqrt(H), 1/sqrt(H)) init.
    bound = 1.0 / (H ** 0.5)
    w_ih = jax.random.uniform(k1, (3 * H, H), jnp.float32, -bound, bound)
    w_hh = jax.random.uniform(k2, (3 * H, H), jnp.float32, -bound, bound)
    b_ih = jax.random.uniform(k3, (3 * H,), jnp.float32, -bound, bound)
    b_hh = jax.random.uniform(k4, (3 * H,), jnp.float32, -bound, bound)

    x = jax.random.normal(kx, (T, B, H), jnp.float32)

    # grid = (B/8, T/8) = (2, 2): exercises both the parallel batch axis and
    # the hidden-state carry across sequential time chunks.
    decoder = Decoder(H, (w_ih, w_hh, b_ih, b_hh), time_block=8, batch_block=8)

    # First call: hidden=None, last_hidden=None -> zeros initial state.
    out1 = jax.block_until_ready(decoder(x))
    # Second call: uses self.last_hidden (statefulness of the module).
    out2 = jax.block_until_ready(decoder(x))

    # Correctness check against pure-JAX reference.
    h0_zero = jnp.zeros((1, B, H), jnp.float32)
    ref1 = gru_forward_ref(x, h0_zero, w_ih, w_hh, b_ih, b_hh)
    ref2 = gru_forward_ref(x, ref1[-1:], w_ih, w_hh, b_ih, b_hh)

    assert jnp.allclose(out1, ref1, atol=1e-5, rtol=1e-5), \
        float(jnp.max(jnp.abs(out1 - ref1)))
    assert jnp.allclose(out2, ref2, atol=1e-5, rtol=1e-5), \
        float(jnp.max(jnp.abs(out2 - ref2)))
    print("KERNEL_OK")
</pallas_src>

<mosaic_0001>
module attributes {stable_mosaic.version = 11 : i64} {
  func.func @_gru_kernel(%arg0: i32, %arg1: i32, %arg2: memref<8x3x8x32xf32, #tpu.memory_space<vmem>>, %arg3: memref<1x8x32xf32, #tpu.memory_space<vmem>>, %arg4: memref<3x32x32xf32, #tpu.memory_space<vmem>>, %arg5: memref<1x32xf32, #tpu.memory_space<vmem>>, %arg6: memref<8x8x32xf32, #tpu.memory_space<vmem>>, %arg7: memref<8x32xf32, #tpu.memory_space<vmem>>) attributes {dimension_semantics = [#tpu.dimension_semantics<parallel>, #tpu.dimension_semantics<arbitrary>], iteration_bounds = array<i64: 2, 2>, scalar_prefetch = 0 : i64, scratch_operands = 1 : i64, tpu.core_type = #tpu.core_type<tc>, window_params = [{transform_indices = @transform_0, window_bounds = array<i64: 8, 3, 8, 32>}, {transform_indices = @transform_1, window_bounds = array<i64: 1, 8, 32>}, {pipeline_mode = #tpu.pipeline_mode<synchronous>, transform_indices = @transform_2, window_bounds = array<i64: 3, 32, 32>}, {pipeline_mode = #tpu.pipeline_mode<synchronous>, transform_indices = @transform_3, window_bounds = array<i64: 1, 32>}, {transform_indices = @transform_4, window_bounds = array<i64: 8, 8, 32>}]} {
    %c0_i32 = arith.constant 0 : i32
    %0 = arith.cmpi eq, %arg1, %c0_i32 : i32
    %1 = arith.extui %0 : i1 to i32
    %c0_i32_0 = arith.constant 0 : i32
    %2 = arith.cmpi ne, %1, %c0_i32_0 : i32
    scf.if %2 {
      %c0_101 = arith.constant 0 : index
      %c0_102 = arith.constant 0 : index
      %c0_103 = arith.constant 0 : index
      %316 = vector.load %arg3[%c0_101, %c0_102, %c0_103] : memref<1x8x32xf32, #tpu.memory_space<vmem>>, vector<1x8x32xf32>
      %317 = vector.shape_cast %316 : vector<1x8x32xf32> to vector<8x32xf32>
      %c0_104 = arith.constant 0 : index
      %c0_105 = arith.constant 0 : index
      %318 = vector.load %arg7[%c0_104, %c0_105] : memref<8x32xf32, #tpu.memory_space<vmem>>, vector<8x32xf32>
      tpu.vector_store %arg7[%c0_104, %c0_105], %317 {strides = array<i32>} : memref<8x32xf32, #tpu.memory_space<vmem>>, vector<8x32xf32>,
    } else {
    }
    %c0 = arith.constant 0 : index
    %c0_1 = arith.constant 0 : index
    %c0_2 = arith.constant 0 : index
    %3 = vector.load %arg4[%c0, %c0_1, %c0_2] : memref<3x32x32xf32, #tpu.memory_space<vmem>>, vector<1x32x32xf32>
    %4 = vector.shape_cast %3 : vector<1x32x32xf32> to vector<32x32xf32>
    %c1 = arith.constant 1 : index
    %c0_3 = arith.constant 0 : index
    %c0_4 = arith.constant 0 : index
    %5 = vector.load %arg4[%c1, %c0_3, %c0_4] : memref<3x32x32xf32, #tpu.memory_space<vmem>>, vector<1x32x32xf32>
    %6 = vector.shape_cast %5 : vector<1x32x32xf32> to vector<32x32xf32>
    %c2 = arith.constant 2 : index
    %c0_5 = arith.constant 0 : index
    %c0_6 = arith.constant 0 : index
    %7 = vector.load %arg4[%c2, %c0_5, %c0_6] : memref<3x32x32xf32, #tpu.memory_space<vmem>>, vector<1x32x32xf32>
    %8 = vector.shape_cast %7 : vector<1x32x32xf32> to vector<32x32xf32>
    %c0_7 = arith.constant 0 : index
    %c0_8 = arith.constant 0 : index
    %9 = vector.load %arg5[%c0_7, %c0_8] : memref<1x32xf32, #tpu.memory_space<vmem>>, vector<1x32xf32>
    %c0_9 = arith.constant 0 : index
    %c0_10 = arith.constant 0 : index
    %10 = vector.load %arg7[%c0_9, %c0_10] : memref<8x32xf32, #tpu.memory_space<vmem>>, vector<8x32xf32>
    %c0_i32_11 = arith.constant 0 : i32
    %11 = arith.index_cast %c0_i32_11 : i32 to index
    %c0_12 = arith.constant 0 : index
    %c0_13 = arith.constant 0 : index
    %c0_14 = arith.constant 0 : index
    %12 = vector.load %arg2[%11, %c0_12, %c0_13, %c0_14] : memref<8x3x8x32xf32, #tpu.memory_space<vmem>>, vector<1x3x8x32xf32>
    %13 = vector.shape_cast %12 : vector<1x3x8x32xf32> to vector<3x8x32xf32>
    %cst = arith.constant dense<0.000000e+00> : vector<8x32xf32>
    %14 = tpu.matmul %10, %4, %cst {dimension_numbers = #tpu.dot_dimension_numbers<[1], [0], [0], [1], [0, 0, 1, 1], [], []>} : vector<8x32xf32>, vector<32x32xf32>, vector<8x32xf32> -> vector<8x32xf32>
    %cst_15 = arith.constant dense<0.000000e+00> : vector<8x32xf32>
    %15 = tpu.matmul %10, %6, %cst_15 {dimension_numbers = #tpu.dot_dimension_numbers<[1], [0], [0], [1], [0, 0, 1, 1], [], []>} : vector<8x32xf32>, vector<32x32xf32>, vector<8x32xf32> -> vector<8x32xf32>
    %cst_16 = arith.constant dense<0.000000e+00> : vector<8x32xf32>
    %16 = tpu.matmul %10, %8, %cst_16 {dimension_numbers = #tpu.dot_dimension_numbers<[1], [0], [0], [1], [0, 0, 1, 1], [], []>} : vector<8x32xf32>, vector<32x32xf32>, vector<8x32xf32> -> vector<8x32xf32>
    %17 = vector.broadcast %9 : vector<1x32xf32> to vector<8x32xf32>
    %18 = arith.addf %16, %17 : vector<8x32xf32>
    %19 = vector.extract_strided_slice %13 {offsets = [0, 0, 0], sizes = [1, 8, 32], strides = [1, 1, 1]} : vector<3x8x32xf32> to vector<1x8x32xf32>
    %20 = vector.shape_cast %19 : vector<1x8x32xf32> to vector<8x32xf32>
    %21 = arith.addf %20, %14 : vector<8x32xf32>
    %22 = arith.negf %21 : vector<8x32xf32>
    %23 = math.exp %22 : vector<8x32xf32>
    %cst_17 = arith.constant 1.000000e+00 : f32
    %24 = vector.broadcast %cst_17 : f32 to vector<8x32xf32>
    %25 = arith.addf %24, %23 : vector<8x32xf32>
    %26 = arith.divf %24, %25 : vector<8x32xf32>
    %27 = vector.extract_strided_slice %13 {offsets = [1, 0, 0], sizes = [1, 8, 32], strides = [1, 1, 1]} : vector<3x8x32xf32> to vector<1x8x32xf32>
    %28 = vector.shape_cast %27 : vector<1x8x32xf32> to vector<8x32xf32>
    %29 = arith.addf %28, %15 : vector<8x32xf32>
    %30 = arith.negf %29 : vector<8x32xf32>
    %31 = math.exp %30 : vector<8x32xf32>
    %cst_18 = arith.constant 1.000000e+00 : f32
    %32 = vector.broadcast %cst_18 : f32 to vector<8x32xf32>
    %33 = arith.addf %32, %31 : vector<8x32xf32>
    %34 = arith.divf %32, %33 : vector<8x32xf32>
    %35 = vector.extract_strided_slice %13 {offsets = [2, 0, 0], sizes = [1, 8, 32], strides = [1, 1, 1]} : vector<3x8x32xf32> to vector<1x8x32xf32>
    %36 = vector.shape_cast %35 : vector<1x8x32xf32> to vector<8x32xf32>
    %37 = arith.mulf %26, %18 : vector<8x32xf32>
    %38 = arith.addf %36, %37 : vector<8x32xf32>
    %39 = math.tanh %38 : vector<8x32xf32>
    %cst_19 = arith.constant 1.000000e+00 : f32
    %40 = vector.broadcast %cst_19 : f32 to vector<8x32xf32>
    %41 = arith.subf %40, %34 : vector<8x32xf32>
    %42 = arith.mulf %41, %39 : vector<8x32xf32>
    %43 = arith.mulf %34, %10 : vector<8x32xf32>
    %44 = arith.addf %42, %43 : vector<8x32xf32>
    %45 = arith.index_cast %c0_i32_11 : i32 to index
    %c0_20 = arith.constant 0 : index
    %c0_21 = arith.constant 0 : index
    %46 = vector.load %arg6[%45, %c0_20, %c0_21] : memref<8x8x32xf32, #tpu.memory_space<vmem>>, vector<1x8x32xf32>
    %47 = vector.shape_cast %46 : vector<1x8x32xf32> to vector<8x32xf32>
    %48 = vector.shape_cast %44 : vector<8x32xf32> to vector<1x8x32xf32>
    tpu.vector_store %arg6[%45, %c0_20, %c0_21], %48 {strides = array<i32>} : memref<8x8x32xf32, #tpu.memory_space<vmem>>, vector<1x8x32xf32>,
    %c1_i32 = arith.constant 1 : i32
    %49 = arith.index_cast %c1_i32 : i32 to index
    %c0_22 = arith.constant 0 : index
    %c0_23 = arith.constant 0 : index
    %c0_24 = arith.constant 0 : index
    %50 = vector.load %arg2[%49, %c0_22, %c0_23, %c0_24] : memref<8x3x8x32xf32, #tpu.memory_space<vmem>>, vector<1x3x8x32xf32>
    %51 = vector.shape_cast %50 : vector<1x3x8x32xf32> to vector<3x8x32xf32>
    %cst_25 = arith.constant dense<0.000000e+00> : vector<8x32xf32>
    %52 = tpu.matmul %44, %4, %cst_25 {dimension_numbers = #tpu.dot_dimension_numbers<[1], [0], [0], [1], [0, 0, 1, 1], [], []>} : vector<8x32xf32>, vector<32x32xf32>, vector<8x32xf32> -> vector<8x32xf32>
    %cst_26 = arith.constant dense<0.000000e+00> : vector<8x32xf32>
    %53 = tpu.matmul %44, %6, %cst_26 {dimension_numbers = #tpu.dot_dimension_numbers<[1], [0], [0], [1], [0, 0, 1, 1], [], []>} : vector<8x32xf32>, vector<32x32xf32>, vector<8x32xf32> -> vector<8x32xf32>
    %cst_27 = arith.constant dense<0.000000e+00> : vector<8x32xf32>
    %54 = tpu.matmul %44, %8, %cst_27 {dimension_numbers = #tpu.dot_dimension_numbers<[1], [0], [0], [1], [0, 0, 1, 1], [], []>} : vector<8x32xf32>, vector<32x32xf32>, vector<8x32xf32> -> vector<8x32xf32>
    %55 = vector.broadcast %9 : vector<1x32xf32> to vector<8x32xf32>
    %56 = arith.addf %54, %55 : vector<8x32xf32>
    %57 = vector.extract_strided_slice %51 {offsets = [0, 0, 0], sizes = [1, 8, 32], strides = [1, 1, 1]} : vector<3x8x32xf32> to vector<1x8x32xf32>
    %58 = vector.shape_cast %57 : vector<1x8x32xf32> to vector<8x32xf32>
    %59 = arith.addf %58, %52 : vector<8x32xf32>
    %60 = arith.negf %59 : vector<8x32xf32>
    %61 = math.exp %60 : vector<8x32xf32>
    %cst_28 = arith.constant 1.000000e+00 : f32
    %62 = vector.broadcast %cst_28 : f32 to vector<8x32xf32>
    %63 = arith.addf %62, %61 : vector<8x32xf32>
    %64 = arith.divf %62, %63 : vector<8x32xf32>
    %65 = vector.extract_strided_slice %51 {offsets = [1, 0, 0], sizes = [1, 8, 32], strides = [1, 1, 1]} : vector<3x8x32xf32> to vector<1x8x32xf32>
    %66 = vector.shape_cast %65 : vector<1x8x32xf32> to vector<8x32xf32>
    %67 = arith.addf %66, %53 : vector<8x32xf32>
    %68 = arith.negf %67 : vector<8x32xf32>
    %69 = math.exp %68 : vector<8x32xf32>
    %cst_29 = arith.constant 1.000000e+00 : f32
    %70 = vector.broadcast %cst_29 : f32 to vector<8x32xf32>
    %71 = arith.addf %70, %69 : vector<8x32xf32>
    %72 = arith.divf %70, %71 : vector<8x32xf32>
    %73 = vector.extract_strided_slice %51 {offsets = [2, 0, 0], sizes = [1, 8, 32], strides = [1, 1, 1]} : vector<3x8x32xf32> to vector<1x8x32xf32>
    %74 = vector.shape_cast %73 : vector<1x8x32xf32> to vector<8x32xf32>
    %75 = arith.mulf %64, %56 : vector<8x32xf32>
    %76 = arith.addf %74, %75 : vector<8x32xf32>
    %77 = math.tanh %76 : vector<8x32xf32>
    %cst_30 = arith.constant 1.000000e+00 : f32
    %78 = vector.broadcast %cst_30 : f32 to vector<8x32xf32>
    %79 = arith.subf %78, %72 : vector<8x32xf32>
    %80 = arith.mulf %79, %77 : vector<8x32xf32>
    %81 = arith.mulf %72, %44 : vector<8x32xf32>
    %82 = arith.addf %80, %81 : vector<8x32xf32>
    %83 = arith.index_cast %c1_i32 : i32 to index
    %c0_31 = arith.constant 0 : index
    %c0_32 = arith.constant 0 : index
    %84 = vector.load %arg6[%83, %c0_31, %c0_32] : memref<8x8x32xf32, #tpu.memory_space<vmem>>, vector<1x8x32xf32>
    %85 = vector.shape_cast %84 : vector<1x8x32xf32> to vector<8x32xf32>
    %86 = vector.shape_cast %82 : vector<8x32xf32> to vector<1x8x32xf32>
    tpu.vector_store %arg6[%83, %c0_31, %c0_32], %86 {strides = array<i32>} : memref<8x8x32xf32, #tpu.memory_space<vmem>>, vector<1x8x32xf32>,
    %c2_i32 = arith.constant 2 : i32
    %87 = arith.index_cast %c2_i32 : i32 to index
    %c0_33 = arith.constant 0 : index
    %c0_34 = arith.constant 0 : index
    %c0_35 = arith.constant 0 : index
    %88 = vector.load %arg2[%87, %c0_33, %c0_34, %c0_35] : memref<8x3x8x32xf32, #tpu.memory_space<vmem>>, vector<1x3x8x32xf32>
    %89 = vector.shape_cast %88 : vector<1x3x8x32xf32> to vector<3x8x32xf32>
    %cst_36 = arith.constant dense<0.000000e+00> : vector<8x32xf32>
    %90 = tpu.matmul %82, %4, %cst_36 {dimension_numbers = #tpu.dot_dimension_numbers<[1], [0], [0], [1], [0, 0, 1, 1], [], []>} : vector<8x32xf32>, vector<32x32xf32>, vector<8x32xf32> -> vector<8x32xf32>
    %cst_37 = arith.constant dense<0.000000e+00> : vector<8x32xf32>
    %91 = tpu.matmul %82, %6, %cst_37 {dimension_numbers = #tpu.dot_dimension_numbers<[1], [0], [0], [1], [0, 0, 1, 1], [], []>} : vector<8x32xf32>, vector<32x32xf32>, vector<8x32xf32> -> vector<8x32xf32>
    %cst_38 = arith.constant dense<0.000000e+00> : vector<8x32xf32>
    %92 = tpu.matmul %82, %8, %cst_38 {dimension_numbers = #tpu.dot_dimension_numbers<[1], [0], [0], [1], [0, 0, 1, 1], [], []>} : vector<8x32xf32>, vector<32x32xf32>, vector<8x32xf32> -> vector<8x32xf32>
    %93 = vector.broadcast %9 : vector<1x32xf32> to vector<8x32xf32>
    %94 = arith.addf %92, %93 : vector<8x32xf32>
    %95 = vector.extract_strided_slice %89 {offsets = [0, 0, 0], sizes = [1, 8, 32], strides = [1, 1, 1]} : vector<3x8x32xf32> to vector<1x8x32xf32>
    %96 = vector.shape_cast %95 : vector<1x8x32xf32> to vector<8x32xf32>
    %97 = arith.addf %96, %90 : vector<8x32xf32>
    %98 = arith.negf %97 : vector<8x32xf32>
    %99 = math.exp %98 : vector<8x32xf32>
    %cst_39 = arith.constant 1.000000e+00 : f32
    %100 = vector.broadcast %cst_39 : f32 to vector<8x32xf32>
    %101 = arith.addf %100, %99 : vector<8x32xf32>
    %102 = arith.divf %100, %101 : vector<8x32xf32>
    %103 = vector.extract_strided_slice %89 {offsets = [1, 0, 0], sizes = [1, 8, 32], strides = [1, 1, 1]} : vector<3x8x32xf32> to vector<1x8x32xf32>
    %104 = vector.shape_cast %103 : vector<1x8x32xf32> to vector<8x32xf32>
    %105 = arith.addf %104, %91 : vector<8x32xf32>
    %106 = arith.negf %105 : vector<8x32xf32>
    %107 = math.exp %106 : vector<8x32xf32>
    %cst_40 = arith.constant 1.000000e+00 : f32
    %108 = vector.broadcast %cst_40 : f32 to vector<8x32xf32>
    %109 = arith.addf %108, %107 : vector<8x32xf32>
    %110 = arith.divf %108, %109 : vector<8x32xf32>
    %111 = vector.extract_strided_slice %89 {offsets = [2, 0, 0], sizes = [1, 8, 32], strides = [1, 1, 1]} : vector<3x8x32xf32> to vector<1x8x32xf32>
    %112 = vector.shape_cast %111 : vector<1x8x32xf32> to vector<8x32xf32>
    %113 = arith.mulf %102, %94 : vector<8x32xf32>
    %114 = arith.addf %112, %113 : vector<8x32xf32>
    %115 = math.tanh %114 : vector<8x32xf32>
    %cst_41 = arith.constant 1.000000e+00 : f32
    %116 = vector.broadcast %cst_41 : f32 to vector<8x32xf32>
    %117 = arith.subf %116, %110 : vector<8x32xf32>
    %118 = arith.mulf %117, %115 : vector<8x32xf32>
    %119 = arith.mulf %110, %82 : vector<8x32xf32>
    %120 = arith.addf %118, %119 : vector<8x32xf32>
    %121 = arith.index_cast %c2_i32 : i32 to index
    %c0_42 = arith.constant 0 : index
    %c0_43 = arith.constant 0 : index
    %122 = vector.load %arg6[%121, %c0_42, %c0_43] : memref<8x8x32xf32, #tpu.memory_space<vmem>>, vector<1x8x32xf32>
    %123 = vector.shape_cast %122 : vector<1x8x32xf32> to vector<8x32xf32>
    %124 = vector.shape_cast %120 : vector<8x32xf32> to vector<1x8x32xf32>
    tpu.vector_store %arg6[%121, %c0_42, %c0_43], %124 {strides = array<i32>} : memref<8x8x32xf32, #tpu.memory_space<vmem>>, vector<1x8x32xf32>,
    %c3_i32 = arith.constant 3 : i32
    %125 = arith.index_cast %c3_i32 : i32 to index
    %c0_44 = arith.constant 0 : index
    %c0_45 = arith.constant 0 : index
    %c0_46 = arith.constant 0 : index
    %126 = vector.load %arg2[%125, %c0_44, %c0_45, %c0_46] : memref<8x3x8x32xf32, #tpu.memory_space<vmem>>, vector<1x3x8x32xf32>
    %127 = vector.shape_cast %126 : vector<1x3x8x32xf32> to vector<3x8x32xf32>
    %cst_47 = arith.constant dense<0.000000e+00> : vector<8x32xf32>
    %128 = tpu.matmul %120, %4, %cst_47 {dimension_numbers = #tpu.dot_dimension_numbers<[1], [0], [0], [1], [0, 0, 1, 1], [], []>} : vector<8x32xf32>, vector<32x32xf32>, vector<8x32xf32> -> vector<8x32xf32>
    %cst_48 = arith.constant dense<0.000000e+00> : vector<8x32xf32>
    %129 = tpu.matmul %120, %6, %cst_48 {dimension_numbers = #tpu.dot_dimension_numbers<[1], [0], [0], [1], [0, 0, 1, 1], [], []>} : vector<8x32xf32>, vector<32x32xf32>, vector<8x32xf32> -> vector<8x32xf32>
    %cst_49 = arith.constant dense<0.000000e+00> : vector<8x32xf32>
    %130 = tpu.matmul %120, %8, %cst_49 {dimension_numbers = #tpu.dot_dimension_numbers<[1], [0], [0], [1], [0, 0, 1, 1], [], []>} : vector<8x32xf32>, vector<32x32xf32>, vector<8x32xf32> -> vector<8x32xf32>
    %131 = vector.broadcast %9 : vector<1x32xf32> to vector<8x32xf32>
    %132 = arith.addf %130, %131 : vector<8x32xf32>
    %133 = vector.extract_strided_slice %127 {offsets = [0, 0, 0], sizes = [1, 8, 32], strides = [1, 1, 1]} : vector<3x8x32xf32> to vector<1x8x32xf32>
    %134 = vector.shape_cast %133 : vector<1x8x32xf32> to vector<8x32xf32>
    %135 = arith.addf %134, %128 : vector<8x32xf32>
    %136 = arith.negf %135 : vector<8x32xf32>
    %137 = math.exp %136 : vector<8x32xf32>
    %cst_50 = arith.constant 1.000000e+00 : f32
    %138 = vector.broadcast %cst_50 : f32 to vector<8x32xf32>
    %139 = arith.addf %138, %137 : vector<8x32xf32>
    %140 = arith.divf %138, %139 : vector<8x32xf32>
    %141 = vector.extract_strided_slice %127 {offsets = [1, 0, 0], sizes = [1, 8, 32], strides = [1, 1, 1]} : vector<3x8x32xf32> to vector<1x8x32xf32>
    %142 = vector.shape_cast %141 : vector<1x8x32xf32> to vector<8x32xf32>
    %143 = arith.addf %142, %129 : vector<8x32xf32>
    %144 = arith.negf %143 : vector<8x32xf32>
    %145 = math.exp %144 : vector<8x32xf32>
    %cst_51 = arith.constant 1.000000e+00 : f32
    %146 = vector.broadcast %cst_51 : f32 to vector<8x32xf32>
    %147 = arith.addf %146, %145 : vector<8x32xf32>
    %148 = arith.divf %146, %147 : vector<8x32xf32>
    %149 = vector.extract_strided_slice %127 {offsets = [2, 0, 0], sizes = [1, 8, 32], strides = [1, 1, 1]} : vector<3x8x32xf32> to vector<1x8x32xf32>
    %150 = vector.shape_cast %149 : vector<1x8x32xf32> to vector<8x32xf32>
    %151 = arith.mulf %140, %132 : vector<8x32xf32>
    %152 = arith.addf %150, %151 : vector<8x32xf32>
    %153 = math.tanh %152 : vector<8x32xf32>
    %cst_52 = arith.constant 1.000000e+00 : f32
    %154 = vector.broadcast %cst_52 : f32 to vector<8x32xf32>
    %155 = arith.subf %154, %148 : vector<8x32xf32>
    %156 = arith.mulf %155, %153 : vector<8x32xf32>
    %157 = arith.mulf %148, %120 : vector<8x32xf32>
    %158 = arith.addf %156, %157 : vector<8x32xf32>
    %159 = arith.index_cast %c3_i32 : i32 to index
    %c0_53 = arith.constant 0 : index
    %c0_54 = arith.constant 0 : index
    %160 = vector.load %arg6[%159, %c0_53, %c0_54] : memref<8x8x32xf32, #tpu.memory_space<vmem>>, vector<1x8x32xf32>
    %161 = vector.shape_cast %160 : vector<1x8x32xf32> to vector<8x32xf32>
    %162 = vector.shape_cast %158 : vector<8x32xf32> to vector<1x8x32xf32>
    tpu.vector_store %arg6[%159, %c0_53, %c0_54], %162 {strides = array<i32>} : memref<8x8x32xf32, #tpu.memory_space<vmem>>, vector<1x8x32xf32>,
    %c4_i32 = arith.constant 4 : i32
    %163 = arith.index_cast %c4_i32 : i32 to index
    %c0_55 = arith.constant 0 : index
    %c0_56 = arith.constant 0 : index
    %c0_57 = arith.constant 0 : index
    %164 = vector.load %arg2[%163, %c0_55, %c0_56, %c0_57] : memref<8x3x8x32xf32, #tpu.memory_space<vmem>>, vector<1x3x8x32xf32>
    %165 = vector.shape_cast %164 : vector<1x3x8x32xf32> to vector<3x8x32xf32>
    %cst_58 = arith.constant dense<0.000000e+00> : vector<8x32xf32>
    %166 = tpu.matmul %158, %4, %cst_58 {dimension_numbers = #tpu.dot_dimension_numbers<[1], [0], [0], [1], [0, 0, 1, 1], [], []>} : vector<8x32xf32>, vector<32x32xf32>, vector<8x32xf32> -> vector<8x32xf32>
    %cst_59 = arith.constant dense<0.000000e+00> : vector<8x32xf32>
    %167 = tpu.matmul %158, %6, %cst_59 {dimension_numbers = #tpu.dot_dimension_numbers<[1], [0], [0], [1], [0, 0, 1, 1], [], []>} : vector<8x32xf32>, vector<32x32xf32>, vector<8x32xf32> -> vector<8x32xf32>
    %cst_60 = arith.constant dense<0.000000e+00> : vector<8x32xf32>
    %168 = tpu.matmul %158, %8, %cst_60 {dimension_numbers = #tpu.dot_dimension_numbers<[1], [0], [0], [1], [0, 0, 1, 1], [], []>} : vector<8x32xf32>, vector<32x32xf32>, vector<8x32xf32> -> vector<8x32xf32>
    %169 = vector.broadcast %9 : vector<1x32xf32> to vector<8x32xf32>
    %170 = arith.addf %168, %169 : vector<8x32xf32>
    %171 = vector.extract_strided_slice %165 {offsets = [0, 0, 0], sizes = [1, 8, 32], strides = [1, 1, 1]} : vector<3x8x32xf32> to vector<1x8x32xf32>
    %172 = vector.shape_cast %171 : vector<1x8x32xf32> to vector<8x32xf32>
    %173 = arith.addf %172, %166 : vector<8x32xf32>
    %174 = arith.negf %173 : vector<8x32xf32>
    %175 = math.exp %174 : vector<8x32xf32>
    %cst_61 = arith.constant 1.000000e+00 : f32
    %176 = vector.broadcast %cst_61 : f32 to vector<8x32xf32>
    %177 = arith.addf %176, %175 : vector<8x32xf32>
    %178 = arith.divf %176, %177 : vector<8x32xf32>
    %179 = vector.extract_strided_slice %165 {offsets = [1, 0, 0], sizes = [1, 8, 32], strides = [1, 1, 1]} : vector<3x8x32xf32> to vector<1x8x32xf32>
    %180 = vector.shape_cast %179 : vector<1x8x32xf32> to vector<8x32xf32>
    %181 = arith.addf %180, %167 : vector<8x32xf32>
    %182 = arith.negf %181 : vector<8x32xf32>
    %183 = math.exp %182 : vector<8x32xf32>
    %cst_62 = arith.constant 1.000000e+00 : f32
    %184 = vector.broadcast %cst_62 : f32 to vector<8x32xf32>
    %185 = arith.addf %184, %183 : vector<8x32xf32>
    %186 = arith.divf %184, %185 : vector<8x32xf32>
    %187 = vector.extract_strided_slice %165 {offsets = [2, 0, 0], sizes = [1, 8, 32], strides = [1, 1, 1]} : vector<3x8x32xf32> to vector<1x8x32xf32>
    %188 = vector.shape_cast %187 : vector<1x8x32xf32> to vector<8x32xf32>
    %189 = arith.mulf %178, %170 : vector<8x32xf32>
    %190 = arith.addf %188, %189 : vector<8x32xf32>
    %191 = math.tanh %190 : vector<8x32xf32>
    %cst_63 = arith.constant 1.000000e+00 : f32
    %192 = vector.broadcast %cst_63 : f32 to vector<8x32xf32>
    %193 = arith.subf %192, %186 : vector<8x32xf32>
    %194 = arith.mulf %193, %191 : vector<8x32xf32>
    %195 = arith.mulf %186, %158 : vector<8x32xf32>
    %196 = arith.addf %194, %195 : vector<8x32xf32>
    %197 = arith.index_cast %c4_i32 : i32 to index
    %c0_64 = arith.constant 0 : index
    %c0_65 = arith.constant 0 : index
    %198 = vector.load %arg6[%197, %c0_64, %c0_65] : memref<8x8x32xf32, #tpu.memory_space<vmem>>, vector<1x8x32xf32>
    %199 = vector.shape_cast %198 : vector<1x8x32xf32> to vector<8x32xf32>
    %200 = vector.shape_cast %196 : vector<8x32xf32> to vector<1x8x32xf32>
    tpu.vector_store %arg6[%197, %c0_64, %c0_65], %200 {strides = array<i32>} : memref<8x8x32xf32, #tpu.memory_space<vmem>>, vector<1x8x32xf32>,
    %c5_i32 = arith.constant 5 : i32
    %201 = arith.index_cast %c5_i32 : i32 to index
    %c0_66 = arith.constant 0 : index
    %c0_67 = arith.constant 0 : index
    %c0_68 = arith.constant 0 : index
    %202 = vector.load %arg2[%201, %c0_66, %c0_67, %c0_68] : memref<8x3x8x32xf32, #tpu.memory_space<vmem>>, vector<1x3x8x32xf32>
    %203 = vector.shape_cast %202 : vector<1x3x8x32xf32> to vector<3x8x32xf32>
    %cst_69 = arith.constant dense<0.000000e+00> : vector<8x32xf32>
    %204 = tpu.matmul %196, %4, %cst_69 {dimension_numbers = #tpu.dot_dimension_numbers<[1], [0], [0], [1], [0, 0, 1, 1], [], []>} : vector<8x32xf32>, vector<32x32xf32>, vector<8x32xf32> -> vector<8x32xf32>
    %cst_70 = arith.constant dense<0.000000e+00> : vector<8x32xf32>
    %205 = tpu.matmul %196, %6, %cst_70 {dimension_numbers = #tpu.dot_dimension_numbers<[1], [0], [0], [1], [0, 0, 1, 1], [], []>} : vector<8x32xf32>, vector<32x32xf32>, vector<8x32xf32> -> vector<8x32xf32>
    %cst_71 = arith.constant dense<0.000000e+00> : vector<8x32xf32>
    %206 = tpu.matmul %196, %8, %cst_71 {dimension_numbers = #tpu.dot_dimension_numbers<[1], [0], [0], [1], [0, 0, 1, 1], [], []>} : vector<8x32xf32>, vector<32x32xf32>, vector<8x32xf32> -> vector<8x32xf32>
    %207 = vector.broadcast %9 : vector<1x32xf32> to vector<8x32xf32>
    %208 = arith.addf %206, %207 : vector<8x32xf32>
    %209 = vector.extract_strided_slice %203 {offsets = [0, 0, 0], sizes = [1, 8, 32], strides = [1, 1, 1]} : vector<3x8x32xf32> to vector<1x8x32xf32>
    %210 = vector.shape_cast %209 : vector<1x8x32xf32> to vector<8x32xf32>
    %211 = arith.addf %210, %204 : vector<8x32xf32>
    %212 = arith.negf %211 : vector<8x32xf32>
    %213 = math.exp %212 : vector<8x32xf32>
    %cst_72 = arith.constant 1.000000e+00 : f32
    %214 = vector.broadcast %cst_72 : f32 to vector<8x32xf32>
    %215 = arith.addf %214, %213 : vector<8x32xf32>
    %216 = arith.divf %214, %215 : vector<8x32xf32>
    %217 = vector.extract_strided_slice %203 {offsets = [1, 0, 0], sizes = [1, 8, 32], strides = [1, 1, 1]} : vector<3x8x32xf32> to vector<1x8x32xf32>
    %218 = vector.shape_cast %217 : vector<1x8x32xf32> to vector<8x32xf32>
    %219 = arith.addf %218, %205 : vector<8x32xf32>
    %220 = arith.negf %219 : vector<8x32xf32>
    %221 = math.exp %220 : vector<8x32xf32>
    %cst_73 = arith.constant 1.000000e+00 : f32
    %222 = vector.broadcast %cst_73 : f32 to vector<8x32xf32>
    %223 = arith.addf %222, %221 : vector<8x32xf32>
    %224 = arith.divf %222, %223 : vector<8x32xf32>
    %225 = vector.extract_strided_slice %203 {offsets = [2, 0, 0], sizes = [1, 8, 32], strides = [1, 1, 1]} : vector<3x8x32xf32> to vector<1x8x32xf32>
    %226 = vector.shape_cast %225 : vector<1x8x32xf32> to vector<8x32xf32>
    %227 = arith.mulf %216, %208 : vector<8x32xf32>
    %228 = arith.addf %226, %227 : vector<8x32xf32>
    %229 = math.tanh %228 : vector<8x32xf32>
    %cst_74 = arith.constant 1.000000e+00 : f32
    %230 = vector.broadcast %cst_74 : f32 to vector<8x32xf32>
    %231 = arith.subf %230, %224 : vector<8x32xf32>
    %232 = arith.mulf %231, %229 : vector<8x32xf32>
    %233 = arith.mulf %224, %196 : vector<8x32xf32>
    %234 = arith.addf %232, %233 : vector<8x32xf32>
    %235 = arith.index_cast %c5_i32 : i32 to index
    %c0_75 = arith.constant 0 : index
    %c0_76 = arith.constant 0 : index
    %236 = vector.load %arg6[%235, %c0_75, %c0_76] : memref<8x8x32xf32, #tpu.memory_space<vmem>>, vector<1x8x32xf32>
    %237 = vector.shape_cast %236 : vector<1x8x32xf32> to vector<8x32xf32>
    %238 = vector.shape_cast %234 : vector<8x32xf32> to vector<1x8x32xf32>
    tpu.vector_store %arg6[%235, %c0_75, %c0_76], %238 {strides = array<i32>} : memref<8x8x32xf32, #tpu.memory_space<vmem>>, vector<1x8x32xf32>,
    %c6_i32 = arith.constant 6 : i32
    %239 = arith.index_cast %c6_i32 : i32 to index
    %c0_77 = arith.constant 0 : index
    %c0_78 = arith.constant 0 : index
    %c0_79 = arith.constant 0 : index
    %240 = vector.load %arg2[%239, %c0_77, %c0_78, %c0_79] : memref<8x3x8x32xf32, #tpu.memory_space<vmem>>, vector<1x3x8x32xf32>
    %241 = vector.shape_cast %240 : vector<1x3x8x32xf32> to vector<3x8x32xf32>
    %cst_80 = arith.constant dense<0.000000e+00> : vector<8x32xf32>
    %242 = tpu.matmul %234, %4, %cst_80 {dimension_numbers = #tpu.dot_dimension_numbers<[1], [0], [0], [1], [0, 0, 1, 1], [], []>} : vector<8x32xf32>, vector<32x32xf32>, vector<8x32xf32> -> vector<8x32xf32>
    %cst_81 = arith.constant dense<0.000000e+00> : vector<8x32xf32>
    %243 = tpu.matmul %234, %6, %cst_81 {dimension_numbers = #tpu.dot_dimension_numbers<[1], [0], [0], [1], [0, 0, 1, 1], [], []>} : vector<8x32xf32>, vector<32x32xf32>, vector<8x32xf32> -> vector<8x32xf32>
    %cst_82 = arith.constant dense<0.000000e+00> : vector<8x32xf32>
    %244 = tpu.matmul %234, %8, %cst_82 {dimension_numbers = #tpu.dot_dimension_numbers<[1], [0], [0], [1], [0, 0, 1, 1], [], []>} : vector<8x32xf32>, vector<32x32xf32>, vector<8x32xf32> -> vector<8x32xf32>
    %245 = vector.broadcast %9 : vector<1x32xf32> to vector<8x32xf32>
    %246 = arith.addf %244, %245 : vector<8x32xf32>
    %247 = vector.extract_strided_slice %241 {offsets = [0, 0, 0], sizes = [1, 8, 32], strides = [1, 1, 1]} : vector<3x8x32xf32> to vector<1x8x32xf32>
    %248 = vector.shape_cast %247 : vector<1x8x32xf32> to vector<8x32xf32>
    %249 = arith.addf %248, %242 : vector<8x32xf32>
    %250 = arith.negf %249 : vector<8x32xf32>
    %251 = math.exp %250 : vector<8x32xf32>
    %cst_83 = arith.constant 1.000000e+00 : f32
    %252 = vector.broadcast %cst_83 : f32 to vector<8x32xf32>
    %253 = arith.addf %252, %251 : vector<8x32xf32>
    %254 = arith.divf %252, %253 : vector<8x32xf32>
    %255 = vector.extract_strided_slice %241 {offsets = [1, 0, 0], sizes = [1, 8, 32], strides = [1, 1, 1]} : vector<3x8x32xf32> to vector<1x8x32xf32>
    %256 = vector.shape_cast %255 : vector<1x8x32xf32> to vector<8x32xf32>
    %257 = arith.addf %256, %243 : vector<8x32xf32>
    %258 = arith.negf %257 : vector<8x32xf32>
    %259 = math.exp %258 : vector<8x32xf32>
    %cst_84 = arith.constant 1.000000e+00 : f32
    %260 = vector.broadcast %cst_84 : f32 to vector<8x32xf32>
    %261 = arith.addf %260, %259 : vector<8x32xf32>
    %262 = arith.divf %260, %261 : vector<8x32xf32>
    %263 = vector.extract_strided_slice %241 {offsets = [2, 0, 0], sizes = [1, 8, 32], strides = [1, 1, 1]} : vector<3x8x32xf32> to vector<1x8x32xf32>
    %264 = vector.shape_cast %263 : vector<1x8x32xf32> to vector<8x32xf32>
    %265 = arith.mulf %254, %246 : vector<8x32xf32>
    %266 = arith.addf %264, %265 : vector<8x32xf32>
    %267 = math.tanh %266 : vector<8x32xf32>
    %cst_85 = arith.constant 1.000000e+00 : f32
    %268 = vector.broadcast %cst_85 : f32 to vector<8x32xf32>
    %269 = arith.subf %268, %262 : vector<8x32xf32>
    %270 = arith.mulf %269, %267 : vector<8x32xf32>
    %271 = arith.mulf %262, %234 : vector<8x32xf32>
    %272 = arith.addf %270, %271 : vector<8x32xf32>
    %273 = arith.index_cast %c6_i32 : i32 to index
    %c0_86 = arith.constant 0 : index
    %c0_87 = arith.constant 0 : index
    %274 = vector.load %arg6[%273, %c0_86, %c0_87] : memref<8x8x32xf32, #tpu.memory_space<vmem>>, vector<1x8x32xf32>
    %275 = vector.shape_cast %274 : vector<1x8x32xf32> to vector<8x32xf32>
    %276 = vector.shape_cast %272 : vector<8x32xf32> to vector<1x8x32xf32>
    tpu.vector_store %arg6[%273, %c0_86, %c0_87], %276 {strides = array<i32>} : memref<8x8x32xf32, #tpu.memory_space<vmem>>, vector<1x8x32xf32>,
    %c7_i32 = arith.constant 7 : i32
    %277 = arith.index_cast %c7_i32 : i32 to index
    %c0_88 = arith.constant 0 : index
    %c0_89 = arith.constant 0 : index
    %c0_90 = arith.constant 0 : index
    %278 = vector.load %arg2[%277, %c0_88, %c0_89, %c0_90] : memref<8x3x8x32xf32, #tpu.memory_space<vmem>>, vector<1x3x8x32xf32>
    %279 = vector.shape_cast %278 : vector<1x3x8x32xf32> to vector<3x8x32xf32>
    %cst_91 = arith.constant dense<0.000000e+00> : vector<8x32xf32>
    %280 = tpu.matmul %272, %4, %cst_91 {dimension_numbers = #tpu.dot_dimension_numbers<[1], [0], [0], [1], [0, 0, 1, 1], [], []>} : vector<8x32xf32>, vector<32x32xf32>, vector<8x32xf32> -> vector<8x32xf32>
    %cst_92 = arith.constant dense<0.000000e+00> : vector<8x32xf32>
    %281 = tpu.matmul %272, %6, %cst_92 {dimension_numbers = #tpu.dot_dimension_numbers<[1], [0], [0], [1], [0, 0, 1, 1], [], []>} : vector<8x32xf32>, vector<32x32xf32>, vector<8x32xf32> -> vector<8x32xf32>
    %cst_93 = arith.constant dense<0.000000e+00> : vector<8x32xf32>
    %282 = tpu.matmul %272, %8, %cst_93 {dimension_numbers = #tpu.dot_dimension_numbers<[1], [0], [0], [1], [0, 0, 1, 1], [], []>} : vector<8x32xf32>, vector<32x32xf32>, vector<8x32xf32> -> vector<8x32xf32>
    %283 = vector.broadcast %9 : vector<1x32xf32> to vector<8x32xf32>
    %284 = arith.addf %282, %283 : vector<8x32xf32>
    %285 = vector.extract_strided_slice %279 {offsets = [0, 0, 0], sizes = [1, 8, 32], strides = [1, 1, 1]} : vector<3x8x32xf32> to vector<1x8x32xf32>
    %286 = vector.shape_cast %285 : vector<1x8x32xf32> to vector<8x32xf32>
    %287 = arith.addf %286, %280 : vector<8x32xf32>
    %288 = arith.negf %287 : vector<8x32xf32>
    %289 = math.exp %288 : vector<8x32xf32>
    %cst_94 = arith.constant 1.000000e+00 : f32
    %290 = vector.broadcast %cst_94 : f32 to vector<8x32xf32>
    %291 = arith.addf %290, %289 : vector<8x32xf32>
    %292 = arith.divf %290, %291 : vector<8x32xf32>
    %293 = vector.extract_strided_slice %279 {offsets = [1, 0, 0], sizes = [1, 8, 32], strides = [1, 1, 1]} : vector<3x8x32xf32> to vector<1x8x32xf32>
    %294 = vector.shape_cast %293 : vector<1x8x32xf32> to vector<8x32xf32>
    %295 = arith.addf %294, %281 : vector<8x32xf32>
    %296 = arith.negf %295 : vector<8x32xf32>
    %297 = math.exp %296 : vector<8x32xf32>
    %cst_95 = arith.constant 1.000000e+00 : f32
    %298 = vector.broadcast %cst_95 : f32 to vector<8x32xf32>
    %299 = arith.addf %298, %297 : vector<8x32xf32>
    %300 = arith.divf %298, %299 : vector<8x32xf32>
    %301 = vector.extract_strided_slice %279 {offsets = [2, 0, 0], sizes = [1, 8, 32], strides = [1, 1, 1]} : vector<3x8x32xf32> to vector<1x8x32xf32>
    %302 = vector.shape_cast %301 : vector<1x8x32xf32> to vector<8x32xf32>
    %303 = arith.mulf %292, %284 : vector<8x32xf32>
    %304 = arith.addf %302, %303 : vector<8x32xf32>
    %305 = math.tanh %304 : vector<8x32xf32>
    %cst_96 = arith.constant 1.000000e+00 : f32
    %306 = vector.broadcast %cst_96 : f32 to vector<8x32xf32>
    %307 = arith.subf %306, %300 : vector<8x32xf32>
    %308 = arith.mulf %307, %305 : vector<8x32xf32>
    %309 = arith.mulf %300, %272 : vector<8x32xf32>
    %310 = arith.addf %308, %309 : vector<8x32xf32>
    %311 = arith.index_cast %c7_i32 : i32 to index
    %c0_97 = arith.constant 0 : index
    %c0_98 = arith.constant 0 : index
    %312 = vector.load %arg6[%311, %c0_97, %c0_98] : memref<8x8x32xf32, #tpu.memory_space<vmem>>, vector<1x8x32xf32>
    %313 = vector.shape_cast %312 : vector<1x8x32xf32> to vector<8x32xf32>
    %314 = vector.shape_cast %310 : vector<8x32xf32> to vector<1x8x32xf32>
    tpu.vector_store %arg6[%311, %c0_97, %c0_98], %314 {strides = array<i32>} : memref<8x8x32xf32, #tpu.memory_space<vmem>>, vector<1x8x32xf32>,
    %c8_i32 = arith.constant 8 : i32
    %c0_99 = arith.constant 0 : index
    %c0_100 = arith.constant 0 : index
    %315 = vector.load %arg7[%c0_99, %c0_100] : memref<8x32xf32, #tpu.memory_space<vmem>>, vector<8x32xf32>
    tpu.vector_store %arg7[%c0_99, %c0_100], %310 {strides = array<i32>} : memref<8x32xf32, #tpu.memory_space<vmem>>, vector<8x32xf32>,
    return
  }
  func.func @transform_0(%arg0: i32, %arg1: i32) -> (i32, i32, i32, i32) {
    %c0_i32 = arith.constant 0 : i32
    %c0_i32_0 = arith.constant 0 : i32
    %c0_i32_1 = arith.constant 0 : i32
    return %arg1, %c0_i32, %arg0, %c0_i32_0 : i32, i32, i32, i32
  }
  func.func @transform_1(%arg0: i32, %arg1: i32) -> (i32, i32, i32) {
    %c0_i32 = arith.constant 0 : i32
    %c0_i32_0 = arith.constant 0 : i32
    %c0_i32_1 = arith.constant 0 : i32
    return %c0_i32, %arg0, %c0_i32_0 : i32, i32, i32
  }
  func.func @transform_2(%arg0: i32, %arg1: i32) -> (i32, i32, i32) {
    %c0_i32 = arith.constant 0 : i32
    %c0_i32_0 = arith.constant 0 : i32
    %c0_i32_1 = arith.constant 0 : i32
    %c0_i32_2 = arith.constant 0 : i32
    return %c0_i32, %c0_i32_0, %c0_i32_1 : i32, i32, i32
  }
  func.func @transform_3(%arg0: i32, %arg1: i32) -> (i32, i32) {
    %c0_i32 = arith.constant 0 : i32
    %c0_i32_0 = arith.constant 0 : i32
    %c0_i32_1 = arith.constant 0 : i32
    return %c0_i32, %c0_i32_0 : i32, i32
  }
  func.func @transform_4(%arg0: i32, %arg1: i32) -> (i32, i32, i32) {
    %c0_i32 = arith.constant 0 : i32
    %c0_i32_0 = arith.constant 0 : i32
    return %arg1, %arg0, %c0_i32 : i32, i32, i32
  }
}

</mosaic_0001>

<bundles_post_ra>
// kernel: gru_forward_pallas.1
= control target key start
LH: loop header
LB: loop body
LE: loop exit
PB: predicated region body
PF: predicated region fallthrough
CT: control target
= control target key end

     0   :  { %9 = vsyncpa [#allocation5], 0  ;;  %s3815_s0 = inlined_call_operand.vmem [shape: f32[16,3,16,32], index: 0, kind: input, shape index: {}]   ;;  %s3816_s1 = inlined_call_operand.vmem [shape: f32[1,16,32], index: 1, kind: input, shape index: {}]   ;;  %s3817_s2 = inlined_call_operand.vmem [shape: f32[3,32,32], index: 2, kind: input, shape index: {}]   ;;  %s3818_s3 = inlined_call_operand.vmem [shape: f32[1,32], index: 3, kind: input, shape index: {}]   ;;  %s3819_s4 = inlined_call_operand.hbm [shape: f32[16,16,32], index: 4, kind: output, shape index: {}]  }
   0x1   :  { %11 = vsyncpa [#allocation5 + $0x1], 0  ;;  %s3331_s15 = smov 0   ;;  %s3333_s16 = smov 0  }
   0x2   :  { %s3335_s17 = smov 0   ;;  %s3337_s18 = smov 0  }
   0x3   :  { %s3339_s19 = smov 0   ;;  %s3341_s20 = smov 0  }
   0x4   :  { %s3343_s21 = smov 0   ;;  %s3345_s22 = smov 0  }
   0x5 LB: > { %s2420_s23 = sadd.s32 4294967295, %s3297_s22   ;;  %s2421_s24 = sadd.s32 4294967294, %s3297_s22   ;;  %s3297_s22 = sphi %s3345_s22, %s17_s22   ;;  %s3293_s21 = sphi %s3343_s21, %s3829_s21   ;;  %s3289_s20 = sphi %s3341_s20, %s3828_s20   ;;  %s3285_s19 = sphi %s3339_s19, %s3827_s19   ;;  %s3281_s18 = sphi %s3337_s18, %s3826_s18   ;;  %s3277_s17 = sphi %s3335_s17, %s3825_s17   ;;  %s3273_s16 = sphi %s3333_s16, %s3824_s16   ;;  %s3269_s15 = sphi %s3331_s15, %s3823_s15  }
   0x6   : > { %s26_s25 = sadd.s32 1, %s3289_s20  ;;  %s29_s26 = sadd.s32 1, %s3293_s21 }
   0x7   : > { %p27_p0 = scmp.ge.s32.totalorder %s26_s25, 2  ;;  %p45_p1 = scmp.ne.s32.totalorder %s3277_s17, %s3273_s16 }
   0x8   : > { %p46_p2 = scmp.eq.s32.totalorder %s3297_s22, 0  ;;  %p145_p5 = scmp.eq.s32.totalorder %s2420_s23, 3 }
   0x9   : > { %s3831_s25 = smov (%p27_p0, %s26_s25), 0  ;;  %s3833_s26 = smov (!%p27_p0, %s29_s26), %s3293_s21 }
   0xa   : > { %s33_s27 = ssub.s32 %s3289_s20, %s3831_s25  ;;  %p3383_p3 = por %p46_p2, %p45_p1 }
   0xb   : > { %p31_p4 = scmp.ge.s32.totalorder %s3833_s26, 2  ;;  %p150_p6 = scmp.ne.s32.totalorder %s3273_s16, %s3269_s15 }
   0xc   : > { %p151_p7 = scmp.eq.s32.totalorder %s2421_s24, 3  ;;  %p3391_p8 = por %p145_p5, %p45_p1 }
   0xd   : > { %s3835_s26 = smov (%p31_p4, %s3833_s26), 0  ;;  %s38_s7 = sadd.s32 1, %s3277_s17 }
   0xe   : > { %p3395_p9 = por %p151_p7, %p150_p6  ;;  %s34_s5 = ssub.s32 %s3293_s21, %s3835_s26 }
   0xf   : > { %s35_s6 = sor.u32 %s34_s5, %s33_s27  ;;  %p2423_p11 = scmp.ge.s32.totalorder %s3297_s22, 4 }
  0x10   : > { %p36_p10 = scmp.eq.s32.totalorder %s35_s6, 0 }
  0x11   : > { %173 = sbr.rel (%p2423_p11) target bundleno = 43 (0x2b), region = 24 }
  0x12   : > { %s3403_s8 = scalar_select %p36_p10, %s3277_s17, %s38_s7  }
  0x18   : > { %176 = sbr.rel (!%p3383_p3) target bundleno = 43 (0x2b), region = 28  ;;  %s178_s9 = sand.u32 (%p3383_p3), 1, %s3277_s17  }
  0x19   : > { %s3044_s10 = smul.u32 (%p3383_p3), 48, %s3289_s20 }
  0x1a   : > { %s3043_s11 = smul.u32 (%p3383_p3), 192, %s178_s9 }
  0x1b   : > { %s183_s12 = sadd.s32 (%p3383_p3), %s3293_s21, %s3044_s10 }
  0x1c   : > { %s2426_s13 = sshll.u32 (%p3383_p3), %s183_s12, 3  ;;  %s3419_s27 = scalar_lea.vmem (%p3383_p3), [#allocation3], %s3043_s11 }
  0x1d   : > { %s3414_s24 = scalar_lea.vmem (%p3383_p3), %s3815_s0, %s2426_s13 }
  0x1e   : > { %v259_v0 = vld [vmem:[%s3414_s24] sm:$0xff] (%p3383_p3)  ;;  %v261_v1 = vld [vmem:[%s3414_s24 + $0x10] sm:$0xff] (%p3383_p3) }
  0x1f   : > { %v263_v2 = vld [vmem:[%s3414_s24 + $0x20] sm:$0xff]  ;;  %260 = vst [vmem:[%s3419_s27] sm:$0xff] %v259_v0  ;;  %262 = vst [vmem:[%s3419_s27 + $0x8] sm:$0xff] %v261_v1  ;;  %v265_v3 = vld [vmem:[%s3414_s24 + $0x30] sm:$0xff] }
  0x20   : > { %264 = vst [vmem:[%s3419_s27 + $0x10] sm:$0xff] %v263_v2  ;;  %v267_v4 = vld [vmem:[%s3414_s24 + $0x40] sm:$0xff]  ;;  %v269_v5 = vld [vmem:[%s3414_s24 + $0x50] sm:$0xff]  ;;  %266 = vst [vmem:[%s3419_s27 + $0x18] sm:$0xff] %v265_v3 }
  0x21   : > { %268 = vst [vmem:[%s3419_s27 + $0x20] sm:$0xff] %v267_v4  ;;  %270 = vst [vmem:[%s3419_s27 + $0x28] sm:$0xff] %v269_v5  ;;  %v271_v6 = vld [vmem:[%s3414_s24 + $0x60] sm:$0xff]  ;;  %v273_v7 = vld [vmem:[%s3414_s24 + $0x70] sm:$0xff] }
  0x22   : > { %v275_v8 = vld [vmem:[%s3414_s24 + $0x80] sm:$0xff]  ;;  %272 = vst [vmem:[%s3419_s27 + $0x30] sm:$0xff] %v271_v6  ;;  %274 = vst [vmem:[%s3419_s27 + $0x38] sm:$0xff] %v273_v7  ;;  %v277_v9 = vld [vmem:[%s3414_s24 + $0x90] sm:$0xff] }
  0x23   : > { %276 = vst [vmem:[%s3419_s27 + $0x40] sm:$0xff] %v275_v8  ;;  %v279_v10 = vld [vmem:[%s3414_s24 + $0xa0] sm:$0xff]  ;;  %v281_v11 = vld [vmem:[%s3414_s24 + $0xb0] sm:$0xff]  ;;  %278 = vst [vmem:[%s3419_s27 + $0x48] sm:$0xff] %v277_v9 }
  0x24   : > { %280 = vst [vmem:[%s3419_s27 + $0x50] sm:$0xff] %v279_v10  ;;  %282 = vst [vmem:[%s3419_s27 + $0x58] sm:$0xff] %v281_v11  ;;  %v283_v12 = vld [vmem:[%s3414_s24 + $0xc0] sm:$0xff]  ;;  %v285_v13 = vld [vmem:[%s3414_s24 + $0xd0] sm:$0xff] }
  0x25   : > { %v287_v14 = vld [vmem:[%s3414_s24 + $0xe0] sm:$0xff]  ;;  %284 = vst [vmem:[%s3419_s27 + $0x60] sm:$0xff] %v283_v12  ;;  %286 = vst [vmem:[%s3419_s27 + $0x68] sm:$0xff] %v285_v13  ;;  %v289_v15 = vld [vmem:[%s3414_s24 + $0xf0] sm:$0xff] }
  0x26   : > { %288 = vst [vmem:[%s3419_s27 + $0x70] sm:$0xff] %v287_v14  ;;  %v291_v16 = vld [vmem:[%s3414_s24 + $0x100] sm:$0xff]  ;;  %v293_v17 = vld [vmem:[%s3414_s24 + $0x110] sm:$0xff]  ;;  %290 = vst [vmem:[%s3419_s27 + $0x78] sm:$0xff] %v289_v15 }
  0x27   : > { %292 = vst [vmem:[%s3419_s27 + $0x80] sm:$0xff] %v291_v16  ;;  %294 = vst [vmem:[%s3419_s27 + $0x88] sm:$0xff] %v293_v17  ;;  %v295_v18 = vld [vmem:[%s3414_s24 + $0x120] sm:$0xff]  ;;  %v297_v19 = vld [vmem:[%s3414_s24 + $0x130] sm:$0xff] }
  0x28   : > { %v299_v20 = vld [vmem:[%s3414_s24 + $0x140] sm:$0xff]  ;;  %296 = vst [vmem:[%s3419_s27 + $0x90] sm:$0xff] %v295_v18  ;;  %298 = vst [vmem:[%s3419_s27 + $0x98] sm:$0xff] %v297_v19  ;;  %v301_v21 = vld [vmem:[%s3414_s24 + $0x150] sm:$0xff] }
  0x29   : > { %300 = vst [vmem:[%s3419_s27 + $0xa0] sm:$0xff] %v299_v20  ;;  %v303_v22 = vld [vmem:[%s3414_s24 + $0x160] sm:$0xff]  ;;  %v305_v23 = vld [vmem:[%s3414_s24 + $0x170] sm:$0xff]  ;;  %302 = vst [vmem:[%s3419_s27 + $0xa8] sm:$0xff] %v301_v21 }
  0x2a   : > { %304 = vst [vmem:[%s3419_s27 + $0xb0] sm:$0xff] %v303_v22  ;;  %306 = vst [vmem:[%s3419_s27 + $0xb8] sm:$0xff] %v305_v23 }
  0x2b PF: > { %p2427_p12 = scmp.ge.s32.totalorder %s3297_s22, 1  ;;  %p318_p13 = scmp.lt.s32.totalorder %s3297_s22, 5 }
  0x2d   : > { %p319_p0 = pnand %p2427_p12, %p318_p13 }
  0x2e   : > { %s3469_s28 = sand.u32 (!%p319_p0), 1, %s3273_s16   ;;  %p355_p1 = scmp.lt.s32.totalorder (!%p319_p0), %s3285_s19, 1 }
  0x2f   : > { %322 = sbr.rel (%p319_p0) target bundleno = 2160 (0x870), region = 70  ;;  %s2428_s6 = sshll.u32 (!%p319_p0), %s3469_s28, 6 }
  0x30   : > { %s3045_s5 = smul.u32 (!%p319_p0), 192, %s3469_s28  ;;  %s3480_s14 = scalar_lea.vmem (!%p319_p0), [#allocation4], %s2428_s6 }
  0x31   : > { %p2430_p2 = scmp.ne.s32.totalorder (!%p319_p0), %s3281_s18, 0 }
  0x32   : > { %s3478_s13 = scalar_lea.vmem (!%p319_p0), [#allocation3], %s3045_s5 }
  0x36   : > { %s356_s7 = scalar_select %p355_p1, %s3285_s19, 1 }
  0x37   : > { %363 = sbr.rel (%p2430_p2) target bundleno = 62 (0x3e), region = 78  ;;  %vm365_vm0 = vcmask (!%p2430_p2), 261120  }
  0x38   : > { %s2429_s9 = sshll.u32 %s356_s7, 3 }
  0x39   : > { %s358_s12 = scalar_lea.vmem %s3816_s1, %s2429_s9 }
  0x3a   : > { %v364_v24 = vld [vmem:[%s358_s12] sm:$0xff] (!%p2430_p2) }
  0x3b   : > { %366 = vst.msk [vmem:[#allocation2] sm:$0xff] (!%p2430_p2), %vm365_vm0, %v364_v24 }
  0x3e PF: > { %v367_v25 = vld [vmem:[%s3817_s2] sm:$0xff]  ;;  %v368_v26 = vld [vmem:[%s3817_s2 + $0x8] sm:$0xff]  ;;  %v369_v27 = vld [vmem:[%s3817_s2 + $0x10] sm:$0xff]  ;;  %v3299_v28 = vmov 0.0|0.0   ;;  %vm3300_vm1 = vmmov 0   ;;  %v3301_v31 = vmov 0.0  }
  0x3f   : > { %2899 = vmatprep.subr.bf16.mxu0 %v3299_v28  ;;  %v3493_v29 = vpack.c.bf16 %v368_v26, %v367_v25  ;;  %v370_v30 = vld [vmem:[%s3817_s2 + $0x18] sm:$0xff]  ;;  %2643 = vmatprep.mubr.msk.f32.mxu0 %vm3300_vm1, %v3301_v31  ;;  %v2431_v32 = vld [vmem:[%s3817_s2 + $0x20] sm:$0xff]  ;;  %v2432_v33 = vld [vmem:[%s3817_s2 + $0x28] sm:$0xff]  ;;  %vm386_vm2 = vcmask 261120   ;;  %s2514_s6 = sshll.u32 %s3281_s18, 4  ;;  %s2325_s12 = sshll.u32 %s3480_s14, 4  ;;  %s3758_s12 = int_to_ptr.vmem [resolvable:$true] %s2325_s12 }
  0x40   : > { %2905 = vmatprep.subr.bf16.mxu1 %v3299_v28  ;;  %v2433_v34 = vld [vmem:[%s3817_s2 + $0x30] sm:$0xff]  ;;  %v2434_v35 = vld [vmem:[%s3817_s2 + $0x38] sm:$0xff]  ;;  %2654 = vmatprep.mubr.msk.f32.mxu1 %vm3300_vm1, %v3301_v31  ;;  %v3516_v36 = vpack.c.bf16 %v370_v30, %v369_v27  ;;  %v3518_v37 = vpack.c.bf16 %v2432_v33, %v2431_v32  ;;  %v2435_v38 = vld [vmem:[%s3817_s2 + $0x40] sm:$0xff]  ;;  %s2322_s10 = sadd.s32 %s3285_s19, %s2514_s6  ;;  %s2310_s18 = scalar_lea.sflag [#allocation5], %s3469_s28 }
  0x41   : > { %2901 = vmatpush3.bf16.msra.mxu0 %v3493_v29  ;;  %v2436_v39 = vld [vmem:[%s3817_s2 + $0x48] sm:$0xff]  ;;  %v3528_v40 = vpack.c.bf16 %v2434_v35, %v2433_v34  ;;  %v2437_v43 = vld [vmem:[%s3817_s2 + $0x50] sm:$0xff]  ;;  %v2438_v44 = vld [vmem:[%s3817_s2 + $0x58] sm:$0xff]  ;;  %s2511_s11 = sshll.u32 %s2322_s10, 7  ;;  %s3203_s19 = scalar_lea.vmem %s3758_s12, 1024 }
  0x42   : > { %2902 = vmatprep.subr.bf16.mxu0 %v3299_v28  ;;  %2907 = vmatpush3.bf16.msra.mxu1 %v3518_v37  ;;  %v382_v41 = vld [vmem:[#allocation2] sm:$0xff]  ;;  %v3532_v42 = vpack.c.bf16 %v2436_v39, %v2435_v38  ;;  %v3545_v45 = vpack.c.bf16 %v2438_v44, %v2437_v43  ;;  %v383_v46 = vld [vmem:[%s3478_s13] sm:$0xff]  ;;  %v384_v48 = vld [vmem:[%s3478_s13 + $0x8] sm:$0xff]  ;;  %p3204_p3 = scmp.ne.s32.totalorder %s3758_s12, %s3203_s19  ;;  %s3302_s27 = smov [#allocation4]  }
  0x43   : > { %2908 = vmatprep.subr.bf16.mxu1 %v3299_v28  ;;  %v3571_v61 = vld [vmem:[%s3818_s3] ss:$0 sm:$0xff]  ;;  %v385_v1 = vld [vmem:[%s3478_s13 + $0x10] sm:$0xff]  ;;  %v2446_v14 = vld [vmem:[%s3478_s13 + $0x20] sm:$0xff]  ;;  %s3207_s7 = sshll.u32 %s3302_s27, 4  ;;  %s3208_s7 = int_to_ptr.vmem [resolvable:$false] %s3207_s7 }
  0x44   : > { %v2445_v10 = vld [vmem:[%s3478_s13 + $0x18] sm:$0xff]  ;;  %v2447_v30 = vld [vmem:[%s3478_s13 + $0x28] sm:$0xff]  ;;  %v2454_v44 = vld [vmem:[%s3478_s13 + $0x30] sm:$0xff]  ;;  %p3205_p4 = pnand %p3204_p3, %p3391_p8  ;;  %s3209_s9 = scalar_lea.vmem %s3208_s7, 2048 }
  0x45   : > { %2904 = vmatpush3.bf16.msra.mxu0 %v3516_v36  ;;  %p3210_p6 = scmp.lt.s32.totalorder %s3758_s12, %s3208_s7  ;;  %p3211_p7 = scmp.lt.s32.totalorder %s3209_s9, %s3203_s19 }
  0x46   : > { %2911 = vmatprep.subr.bf16.mxu0 %v3299_v28  ;;  %2910 = vmatpush3.bf16.msra.mxu1 %v3528_v40  ;;  %p3206_p5 = pneg %p3205_p4 }
  0x47   : > { %2917 = vmatprep.subr.bf16.mxu1 %v3299_v28  ;;  %p3212_p10 = por %p3211_p7, %p3210_p6 }
  0x48   : > { %2644 = vmatmul.mubr.msk.f32.vlgmr.msra.gmra.mrb[0].mxu0 %vm386_vm2, %v382_v41 }
  0x49   : > { %2913 = vmatpush3.bf16.msra.mxu0 %v3532_v42  ;;  %2665 = vmatprep.mubr.msk.f32.mxu0 %vm3300_vm1, %v3301_v31  ;;  %p3213_p11 = pnand %p3212_p10, %p3206_p5 }
  0x4a   : > { %2655 = vmatmul.mubr.msk.f32.vlgmr.msra.gmra.mrb[0].mxu1 %vm386_vm2, %v382_v41  ;;  %2914 = vmatprep.subr.bf16.mxu0 %v3299_v28 }
  0x4b   : > { %2919 = vmatpush3.bf16.msra.mxu1 %v3493_v29  ;;  %2676 = vmatprep.mubr.msk.f32.mxu1 %vm3300_vm1, %v3301_v31 }
  0x4c   : > { %2920 = vmatprep.subr.bf16.mxu1 %v3299_v28 }
  0x4d   : > { %2916 = vmatpush3.bf16.msra.mxu0 %v3545_v45 }
  0x4e   : > { %2923 = vmatprep.subr.bf16.mxu0 %v3299_v28 }
  0x4f   : > { %2922 = vmatpush3.bf16.msra.mxu1 %v3516_v36 }
  0x50   : > { %2666 = vmatmul.mubr.msk.f32.vlgmr.msra.gmra.mrb[2].mxu0 %vm386_vm2, %v382_v41  ;;  %2929 = vmatprep.subr.bf16.mxu1 %v3299_v28 }
  0x51   : > { %2925 = vmatpush3.bf16.msra.mxu0 %v3518_v37  ;;  %2687 = vmatprep.mubr.msk.f32.mxu0 %vm3300_vm1, %v3301_v31 }
  0x52   : > { %2926 = vmatprep.subr.bf16.mxu0 %v3299_v28 }
  0x55   : > { %2928 = vmatpush3.bf16.msra.mxu0 %v3528_v40 }
  0x56   : > { %2935 = vmatprep.subr.bf16.mxu0 %v3299_v28 }
 0x11b   : > { %v456_v47 = vpop.f32.mrb[0].mxu0 }
 0x11c   : > { %v606_v49 = vadd.f32 %v456_v47, %v383_v46  ;;  %v2645_v50 = vpop.f32.mrb[1].mxu0 }
 0x11d   : > { %v526_v51 = vpop.f32.mrb[0].mxu1 }
 0x11e   : > { %v2443_v52 = vmul.f32 -1.442695, %v606_v49  ;;  %v613_v53 = vadd.f32 %v526_v51, %v384_v48  ;;  %v2656_v54 = vpop.f32.mrb[1].mxu1  ;;  %v2455_v49 = vld [vmem:[%s3478_s13 + $0x38] sm:$0xff] }
 0x120   : > { %3123 = vpow2.f32 %v2443_v52  ;;  %v2444_v55 = vmul.f32 -1.442695, %v613_v53 }
 0x122   : > { %3125 = vpow2.f32 %v2444_v55 }
 0x123   : > { %v602_v56 = vpop.f32.mrb[2].mxu0 }
 0x124   : > { %v2667_v57 = vpop.f32.mrb[3].mxu0  ;;  %v603_v63 = vadd.f32 %v3571_v61, %v602_v56 }
 0x12a   : > { %v3124_v58 = vpop.eup %3123 }
 0x12b   : > { %v610_v59 = vadd.f32 1.0, %v3124_v58 }
 0x12c   : > { %v3126_v60 = vpop.eup %3125 }
 0x12d   : > { %3127 = vrcp.f32 %v610_v59  ;;  %v617_v62 = vadd.f32 1.0, %v3126_v60 }
 0x12f   : > { %3129 = vrcp.f32 %v617_v62 }
 0x137   : > { %v3128_v0 = vpop.eup %3127 }
 0x138   : > { %v620_v2 = vmul.f32 %v3128_v0, %v603_v63  ;;  %v2456_v0 = vld [vmem:[%s3478_s13 + $0x40] sm:$0xff] }
 0x139   : > { %v3130_v4 = vpop.eup %3129 }
 0x13a   : > { %v621_v3 = vadd.f32 %v620_v2, %v385_v1  ;;  %v623_v5 = vsub.f32 1.0, %v3130_v4  ;;  %v625_v8 = vmul.f32 %v3130_v4, %v382_v41 }
 0x13c   : > { %3131 = vtanh.f32 %v621_v3 }
 0x146   : > { %v3132_v6 = vpop.eup %3131 }
 0x147   : > { %v624_v7 = vmul.f32 %v3132_v6, %v623_v5 }
 0x149   : > { %v626_v9 = vadd.f32 %v625_v8, %v624_v7 }
 0x14b   : > { %627 = vst.msk [vmem:[%s3480_s14] sm:$0xff] %vm386_vm2, %v626_v9  ;;  %2677 = vmatmul.mubr.msk.f32.vlgmr.msra.gmra.mrb[2].mxu1 %vm386_vm2, %v626_v9  ;;  %2688 = vmatmul.mubr.msk.f32.vlgmr.msra.gmra.mrb[4].mxu0 %vm386_vm2, %v626_v9 }
 0x14c   : > { %2931 = vmatpush3.bf16.msra.mxu1 %v3532_v42  ;;  %2698 = vmatprep.mubr.msk.f32.mxu1 %vm3300_vm1, %v3301_v31 }
 0x14d   : > { %2932 = vmatprep.subr.bf16.mxu1 %v3299_v28  ;;  %2937 = vmatpush3.bf16.msra.mxu0 %v3493_v29 }
 0x14e   : > { %2938 = vmatprep.subr.bf16.mxu0 %v3299_v28  ;;  %2709 = vmatprep.mubr.msk.f32.mxu0 %vm3300_vm1, %v3301_v31 }
 0x150   : > { %2934 = vmatpush3.bf16.msra.mxu1 %v3545_v45 }
 0x151   : > { %2941 = vmatprep.subr.bf16.mxu1 %v3299_v28  ;;  %2940 = vmatpush3.bf16.msra.mxu0 %v3516_v36 }
 0x152   : > { %2947 = vmatprep.subr.bf16.mxu0 %v3299_v28 }
 0x153   : > { %2699 = vmatmul.mubr.msk.f32.vlgmr.msra.gmra.mrb[4].mxu1 %vm386_vm2, %v626_v9 }
 0x154   : > { %2943 = vmatpush3.bf16.msra.mxu1 %v3518_v37  ;;  %2720 = vmatprep.mubr.msk.f32.mxu1 %vm3300_vm1, %v3301_v31 }
 0x155   : > { %2944 = vmatprep.subr.bf16.mxu1 %v3299_v28 }
 0x158   : > { %2946 = vmatpush3.bf16.msra.mxu1 %v3528_v40 }
 0x159   : > { %2953 = vmatprep.subr.bf16.mxu1 %v3299_v28 }
 0x21e   : > { %v701_v11 = vpop.f32.mrb[2].mxu1  ;;  %v771_v12 = vpop.f32.mrb[4].mxu0 }
 0x21f   : > { %v845_v13 = vadd.f32 %v2445_v10, %v701_v11  ;;  %v2678_v15 = vpop.f32.mrb[3].mxu1  ;;  %v2689_v16 = vpop.f32.mrb[5].mxu0  ;;  %v852_v18 = vadd.f32 %v2446_v14, %v771_v12 }
 0x221   : > { %v2451_v17 = vmul.f32 -1.442695, %v845_v13  ;;  %v2452_v19 = vmul.f32 -1.442695, %v852_v18  ;;  %v2464_v13 = vld [vmem:[%s3478_s13 + $0x50] sm:$0xff] }
 0x223   : > { %3133 = vpow2.f32 %v2451_v17 }
 0x224   : > { %3135 = vpow2.f32 %v2452_v19 }
 0x226   : > { %v841_v20 = vpop.f32.mrb[4].mxu1 }
 0x227   : > { %v2700_v21 = vpop.f32.mrb[5].mxu1  ;;  %v842_v26 = vadd.f32 %v3571_v61, %v841_v20 }
 0x22d   : > { %v3134_v22 = vpop.eup %3133 }
 0x22e   : > { %v849_v23 = vadd.f32 1.0, %v3134_v22  ;;  %v3136_v24 = vpop.eup %3135 }
 0x22f   : > { %v856_v25 = vadd.f32 1.0, %v3136_v24 }
 0x230   : > { %3137 = vrcp.f32 %v849_v23 }
 0x231   : > { %3139 = vrcp.f32 %v856_v25 }
 0x23a   : > { %v3138_v27 = vpop.eup %3137 }
 0x23b   : > { %v859_v32 = vmul.f32 %v3138_v27, %v842_v26  ;;  %v3140_v34 = vpop.eup %3139  ;;  %v2465_v27 = vld [vmem:[%s3478_s13 + $0x58] sm:$0xff] }
 0x23c   : > { %v862_v35 = vsub.f32 1.0, %v3140_v34  ;;  %v864_v41 = vmul.f32 %v3140_v34, %v626_v9  ;;  %v2463_v9 = vld [vmem:[%s3478_s13 + $0x48] sm:$0xff] }
 0x23d   : > { %v860_v33 = vadd.f32 %v2447_v30, %v859_v32 }
 0x23f   : > { %3141 = vtanh.f32 %v860_v33 }
 0x249   : > { %v3142_v38 = vpop.eup %3141 }
 0x24a   : > { %v863_v39 = vmul.f32 %v3142_v38, %v862_v35 }
 0x24c   : > { %v865_v43 = vadd.f32 %v864_v41, %v863_v39 }
 0x24e   : > { %2453 = vst.msk [vmem:[%s3480_s14 + $0x8] sm:$0xff] %vm386_vm2, %v865_v43  ;;  %2710 = vmatmul.mubr.msk.f32.vlgmr.msra.gmra.mrb[6].mxu0 %vm386_vm2, %v865_v43  ;;  %2721 = vmatmul.mubr.msk.f32.vlgmr.msra.gmra.mrb[6].mxu1 %vm386_vm2, %v865_v43 }
 0x24f   : > { %2949 = vmatpush3.bf16.msra.mxu0 %v3532_v42  ;;  %2731 = vmatprep.mubr.msk.f32.mxu0 %vm3300_vm1, %v3301_v31 }
 0x250   : > { %2950 = vmatprep.subr.bf16.mxu0 %v3299_v28  ;;  %2955 = vmatpush3.bf16.msra.mxu1 %v3493_v29 }
 0x251   : > { %2956 = vmatprep.subr.bf16.mxu1 %v3299_v28  ;;  %2742 = vmatprep.mubr.msk.f32.mxu1 %vm3300_vm1, %v3301_v31 }
 0x253   : > { %2952 = vmatpush3.bf16.msra.mxu0 %v3545_v45 }
 0x254   : > { %2959 = vmatprep.subr.bf16.mxu0 %v3299_v28  ;;  %2958 = vmatpush3.bf16.msra.mxu1 %v3516_v36 }
 0x255   : > { %2965 = vmatprep.subr.bf16.mxu1 %v3299_v28 }
 0x256   : > { %2732 = vmatmul.mubr.msk.f32.vlgmr.msra.gmra.mrb[8].mxu0 %vm386_vm2, %v865_v43 }
 0x257   : > { %2961 = vmatpush3.bf16.msra.mxu0 %v3518_v37  ;;  %2753 = vmatprep.mubr.msk.f32.mxu0 %vm3300_vm1, %v3301_v31 }
 0x258   : > { %2962 = vmatprep.subr.bf16.mxu0 %v3299_v28 }
 0x25b   : > { %2964 = vmatpush3.bf16.msra.mxu0 %v3528_v40 }
 0x25c   : > { %2971 = vmatprep.subr.bf16.mxu0 %v3299_v28 }
 0x321   : > { %v941_v46 = vpop.f32.mrb[6].mxu0  ;;  %v1011_v47 = vpop.f32.mrb[6].mxu1 }
 0x322   : > { %v1085_v48 = vadd.f32 %v2454_v44, %v941_v46  ;;  %v2711_v50 = vpop.f32.mrb[7].mxu0  ;;  %v2722_v51 = vpop.f32.mrb[7].mxu1  ;;  %v1092_v53 = vadd.f32 %v2455_v49, %v1011_v47 }
 0x324   : > { %v2460_v52 = vmul.f32 -1.442695, %v1085_v48  ;;  %v2461_v54 = vmul.f32 -1.442695, %v1092_v53  ;;  %v2473_v48 = vld [vmem:[%s3478_s13 + $0x68] sm:$0xff] }
 0x326   : > { %3143 = vpow2.f32 %v2460_v52 }
 0x327   : > { %3145 = vpow2.f32 %v2461_v54 }
 0x329   : > { %v1081_v55 = vpop.f32.mrb[8].mxu0 }
 0x32a   : > { %v2733_v56 = vpop.f32.mrb[9].mxu0  ;;  %v1082_v62 = vadd.f32 %v3571_v61, %v1081_v55 }
 0x330   : > { %v3144_v57 = vpop.eup %3143 }
 0x331   : > { %v1089_v58 = vadd.f32 1.0, %v3144_v57  ;;  %v3146_v59 = vpop.eup %3145 }
 0x332   : > { %v1096_v60 = vadd.f32 1.0, %v3146_v59 }
 0x333   : > { %3147 = vrcp.f32 %v1089_v58 }
 0x334   : > { %3149 = vrcp.f32 %v1096_v60 }
 0x33d   : > { %v3148_v63 = vpop.eup %3147 }
 0x33e   : > { %v1099_v1 = vmul.f32 %v3148_v63, %v1082_v62  ;;  %v3150_v3 = vpop.eup %3149  ;;  %v2474_v63 = vld [vmem:[%s3478_s13 + $0x70] sm:$0xff] }
 0x33f   : > { %v1102_v4 = vsub.f32 1.0, %v3150_v3  ;;  %v1104_v7 = vmul.f32 %v3150_v3, %v865_v43  ;;  %v2472_v43 = vld [vmem:[%s3478_s13 + $0x60] sm:$0xff] }
 0x340   : > { %v1100_v2 = vadd.f32 %v2456_v0, %v1099_v1 }
 0x342   : > { %3151 = vtanh.f32 %v1100_v2 }
 0x34c   : > { %v3152_v5 = vpop.eup %3151 }
 0x34d   : > { %v1103_v6 = vmul.f32 %v3152_v5, %v1102_v4 }
 0x34f   : > { %v1105_v8 = vadd.f32 %v1104_v7, %v1103_v6 }
 0x351   : > { %2462 = vst.msk [vmem:[%s3480_s14 + $0x10] sm:$0xff] %vm386_vm2, %v1105_v8  ;;  %2743 = vmatmul.mubr.msk.f32.vlgmr.msra.gmra.mrb[8].mxu1 %vm386_vm2, %v1105_v8  ;;  %2754 = vmatmul.mubr.msk.f32.vlgmr.msra.gmra.mrb[10].mxu0 %vm386_vm2, %v1105_v8 }
 0x352   : > { %2967 = vmatpush3.bf16.msra.mxu1 %v3532_v42  ;;  %2764 = vmatprep.mubr.msk.f32.mxu1 %vm3300_vm1, %v3301_v31 }
 0x353   : > { %2968 = vmatprep.subr.bf16.mxu1 %v3299_v28  ;;  %2973 = vmatpush3.bf16.msra.mxu0 %v3493_v29 }
 0x354   : > { %2974 = vmatprep.subr.bf16.mxu0 %v3299_v28  ;;  %2775 = vmatprep.mubr.msk.f32.mxu0 %vm3300_vm1, %v3301_v31 }
 0x356   : > { %2970 = vmatpush3.bf16.msra.mxu1 %v3545_v45 }
 0x357   : > { %2977 = vmatprep.subr.bf16.mxu1 %v3299_v28  ;;  %2976 = vmatpush3.bf16.msra.mxu0 %v3516_v36 }
 0x358   : > { %2983 = vmatprep.subr.bf16.mxu0 %v3299_v28 }
 0x359   : > { %2765 = vmatmul.mubr.msk.f32.vlgmr.msra.gmra.mrb[10].mxu1 %vm386_vm2, %v1105_v8 }
 0x35a   : > { %2979 = vmatpush3.bf16.msra.mxu1 %v3518_v37  ;;  %2786 = vmatprep.mubr.msk.f32.mxu1 %vm3300_vm1, %v3301_v31 }
 0x35b   : > { %2980 = vmatprep.subr.bf16.mxu1 %v3299_v28 }
 0x35e   : > { %2982 = vmatpush3.bf16.msra.mxu1 %v3528_v40 }
 0x35f   : > { %2989 = vmatprep.subr.bf16.mxu1 %v3299_v28 }
 0x424   : > { %v1181_v10 = vpop.f32.mrb[8].mxu1  ;;  %v1251_v11 = vpop.f32.mrb[10].mxu0 }
 0x425   : > { %v1325_v12 = vadd.f32 %v2463_v9, %v1181_v10  ;;  %v2744_v14 = vpop.f32.mrb[9].mxu1  ;;  %v2755_v15 = vpop.f32.mrb[11].mxu0  ;;  %v1332_v17 = vadd.f32 %v2464_v13, %v1251_v11 }
 0x427   : > { %v2469_v16 = vmul.f32 -1.442695, %v1325_v12  ;;  %v2470_v18 = vmul.f32 -1.442695, %v1332_v17  ;;  %v2482_v12 = vld [vmem:[%s3478_s13 + $0x80] sm:$0xff] }
 0x429   : > { %3153 = vpow2.f32 %v2469_v16 }
 0x42a   : > { %3155 = vpow2.f32 %v2470_v18 }
 0x42c   : > { %v1321_v19 = vpop.f32.mrb[10].mxu1 }
 0x42d   : > { %v2766_v20 = vpop.f32.mrb[11].mxu1  ;;  %v1322_v25 = vadd.f32 %v3571_v61, %v1321_v19 }
 0x433   : > { %v3154_v21 = vpop.eup %3153 }
 0x434   : > { %v1329_v22 = vadd.f32 1.0, %v3154_v21  ;;  %v3156_v23 = vpop.eup %3155 }
 0x435   : > { %v1336_v24 = vadd.f32 1.0, %v3156_v23 }
 0x436   : > { %3157 = vrcp.f32 %v1329_v22 }
 0x437   : > { %3159 = vrcp.f32 %v1336_v24 }
 0x440   : > { %v3158_v26 = vpop.eup %3157 }
 0x441   : > { %v1339_v30 = vmul.f32 %v3158_v26, %v1322_v25  ;;  %v3160_v33 = vpop.eup %3159  ;;  %v2483_v26 = vld [vmem:[%s3478_s13 + $0x88] sm:$0xff] }
 0x442   : > { %v1342_v34 = vsub.f32 1.0, %v3160_v33  ;;  %v1344_v39 = vmul.f32 %v3160_v33, %v1105_v8  ;;  %v2481_v8 = vld [vmem:[%s3478_s13 + $0x78] sm:$0xff] }
 0x443   : > { %v1340_v32 = vadd.f32 %v2465_v27, %v1339_v30 }
 0x445   : > { %3161 = vtanh.f32 %v1340_v32 }
 0x44f   : > { %v3162_v35 = vpop.eup %3161 }
 0x450   : > { %v1343_v38 = vmul.f32 %v3162_v35, %v1342_v34 }
 0x452   : > { %v1345_v41 = vadd.f32 %v1344_v39, %v1343_v38 }
 0x454   : > { %2471 = vst.msk [vmem:[%s3480_s14 + $0x18] sm:$0xff] %vm386_vm2, %v1345_v41  ;;  %2776 = vmatmul.mubr.msk.f32.vlgmr.msra.gmra.mrb[12].mxu0 %vm386_vm2, %v1345_v41  ;;  %2787 = vmatmul.mubr.msk.f32.vlgmr.msra.gmra.mrb[12].mxu1 %vm386_vm2, %v1345_v41 }
 0x455   : > { %2985 = vmatpush3.bf16.msra.mxu0 %v3532_v42  ;;  %2797 = vmatprep.mubr.msk.f32.mxu0 %vm3300_vm1, %v3301_v31 }
 0x456   : > { %2986 = vmatprep.subr.bf16.mxu0 %v3299_v28  ;;  %2991 = vmatpush3.bf16.msra.mxu1 %v3493_v29 }
 0x457   : > { %2992 = vmatprep.subr.bf16.mxu1 %v3299_v28  ;;  %2808 = vmatprep.mubr.msk.f32.mxu1 %vm3300_vm1, %v3301_v31 }
 0x459   : > { %2988 = vmatpush3.bf16.msra.mxu0 %v3545_v45 }
 0x45a   : > { %2995 = vmatprep.subr.bf16.mxu0 %v3299_v28  ;;  %2994 = vmatpush3.bf16.msra.mxu1 %v3516_v36 }
 0x45b   : > { %3001 = vmatprep.subr.bf16.mxu1 %v3299_v28 }
 0x45c   : > { %2798 = vmatmul.mubr.msk.f32.vlgmr.msra.gmra.mrb[14].mxu0 %vm386_vm2, %v1345_v41 }
 0x45d   : > { %2997 = vmatpush3.bf16.msra.mxu0 %v3518_v37  ;;  %2819 = vmatprep.mubr.msk.f32.mxu0 %vm3300_vm1, %v3301_v31 }
 0x45e   : > { %2998 = vmatprep.subr.bf16.mxu0 %v3299_v28 }
 0x461   : > { %3000 = vmatpush3.bf16.msra.mxu0 %v3528_v40 }
 0x462   : > { %3007 = vmatprep.subr.bf16.mxu0 %v3299_v28 }
 0x527   : > { %v1421_v44 = vpop.f32.mrb[12].mxu0  ;;  %v1491_v46 = vpop.f32.mrb[12].mxu1 }
 0x528   : > { %v1565_v47 = vadd.f32 %v2472_v43, %v1421_v44  ;;  %v2777_v49 = vpop.f32.mrb[13].mxu0  ;;  %v2788_v50 = vpop.f32.mrb[13].mxu1  ;;  %v1572_v52 = vadd.f32 %v2473_v48, %v1491_v46  ;;  %v2491_v46 = vld [vmem:[%s3478_s13 + $0x98] sm:$0xff] }
 0x52a   : > { %v2478_v51 = vmul.f32 -1.442695, %v1565_v47  ;;  %v2479_v53 = vmul.f32 -1.442695, %v1572_v52 }
 0x52c   : > { %3163 = vpow2.f32 %v2478_v51 }
 0x52d   : > { %3165 = vpow2.f32 %v2479_v53 }
 0x52f   : > { %v1561_v54 = vpop.f32.mrb[14].mxu0 }
 0x530   : > { %v2799_v55 = vpop.f32.mrb[15].mxu0  ;;  %v1562_v60 = vadd.f32 %v3571_v61, %v1561_v54 }
 0x536   : > { %v3164_v56 = vpop.eup %3163 }
 0x537   : > { %v1569_v57 = vadd.f32 1.0, %v3164_v56  ;;  %v3166_v58 = vpop.eup %3165 }
 0x538   : > { %v1576_v59 = vadd.f32 1.0, %v3166_v58 }
 0x539   : > { %3167 = vrcp.f32 %v1569_v57  ;;  %v2492_v57 = vld [vmem:[%s3478_s13 + $0xa0] sm:$0xff] }
 0x53a   : > { %3169 = vrcp.f32 %v1576_v59 }
 0x543   : > { %v3168_v62 = vpop.eup %3167 }
 0x544   : > { %v1579_v0 = vmul.f32 %v3168_v62, %v1562_v60  ;;  %v3170_v2 = vpop.eup %3169 }
 0x545   : > { %v1582_v3 = vsub.f32 1.0, %v3170_v2  ;;  %v1584_v6 = vmul.f32 %v3170_v2, %v1345_v41 }
 0x546   : > { %v1580_v1 = vadd.f32 %v2474_v63, %v1579_v0 }
 0x548   : > { %3171 = vtanh.f32 %v1580_v1 }
 0x552   : > { %v3172_v4 = vpop.eup %3171 }
 0x553   : > { %v1583_v5 = vmul.f32 %v3172_v4, %v1582_v3  ;;  %v2499_v3 = vld [vmem:[%s3478_s13 + $0xa8] sm:$0xff] }
 0x555   : > { %v1585_v7 = vadd.f32 %v1584_v6, %v1583_v5 }
 0x557   : > { %2480 = vst.msk [vmem:[%s3480_s14 + $0x20] sm:$0xff] %vm386_vm2, %v1585_v7  ;;  %2809 = vmatmul.mubr.msk.f32.vlgmr.msra.gmra.mrb[14].mxu1 %vm386_vm2, %v1585_v7  ;;  %2820 = vmatmul.mubr.msk.f32.vlgmr.msra.gmra.mrb[16].mxu0 %vm386_vm2, %v1585_v7 }
 0x558   : > { %3003 = vmatpush3.bf16.msra.mxu1 %v3532_v42  ;;  %2830 = vmatprep.mubr.msk.f32.mxu1 %vm3300_vm1, %v3301_v31 }
 0x559   : > { %3004 = vmatprep.subr.bf16.mxu1 %v3299_v28  ;;  %3009 = vmatpush3.bf16.msra.mxu0 %v3493_v29 }
 0x55a   : > { %3010 = vmatprep.subr.bf16.mxu0 %v3299_v28  ;;  %2841 = vmatprep.mubr.msk.f32.mxu0 %vm3300_vm1, %v3301_v31 }
 0x55c   : > { %3006 = vmatpush3.bf16.msra.mxu1 %v3545_v45 }
 0x55d   : > { %3013 = vmatprep.subr.bf16.mxu1 %v3299_v28  ;;  %3012 = vmatpush3.bf16.msra.mxu0 %v3516_v36 }
 0x55e   : > { %3019 = vmatprep.subr.bf16.mxu0 %v3299_v28 }
 0x55f   : > { %2831 = vmatmul.mubr.msk.f32.vlgmr.msra.gmra.mrb[16].mxu1 %vm386_vm2, %v1585_v7 }
 0x560   : > { %3015 = vmatpush3.bf16.msra.mxu1 %v3518_v37  ;;  %2852 = vmatprep.mubr.msk.f32.mxu1 %vm3300_vm1, %v3301_v31 }
 0x561   : > { %3016 = vmatprep.subr.bf16.mxu1 %v3299_v28 }
 0x564   : > { %3018 = vmatpush3.bf16.msra.mxu1 %v3528_v40 }
 0x565   : > { %3025 = vmatprep.subr.bf16.mxu1 %v3299_v28 }
 0x62a   : > { %v1661_v9 = vpop.f32.mrb[14].mxu1  ;;  %v1731_v10 = vpop.f32.mrb[16].mxu0 }
 0x62b   : > { %v1805_v11 = vadd.f32 %v2481_v8, %v1661_v9  ;;  %v2810_v13 = vpop.f32.mrb[15].mxu1  ;;  %v2821_v14 = vpop.f32.mrb[17].mxu0  ;;  %v1812_v16 = vadd.f32 %v2482_v12, %v1731_v10 }
 0x62d   : > { %v2487_v15 = vmul.f32 -1.442695, %v1805_v11  ;;  %v2488_v17 = vmul.f32 -1.442695, %v1812_v16 }
 0x62f   : > { %3173 = vpow2.f32 %v2487_v15 }
 0x630   : > { %3175 = vpow2.f32 %v2488_v17  ;;  %v2501_v17 = vld [vmem:[%s3478_s13 + $0xb8] sm:$0xff] }
 0x632   : > { %v1801_v18 = vpop.f32.mrb[16].mxu1 }
 0x633   : > { %v2832_v19 = vpop.f32.mrb[17].mxu1  ;;  %v1802_v24 = vadd.f32 %v3571_v61, %v1801_v18 }
 0x639   : > { %v3174_v20 = vpop.eup %3173 }
 0x63a   : > { %v1809_v21 = vadd.f32 1.0, %v3174_v20  ;;  %v3176_v22 = vpop.eup %3175 }
 0x63b   : > { %v1816_v23 = vadd.f32 1.0, %v3176_v22 }
 0x63c   : > { %3177 = vrcp.f32 %v1809_v21 }
 0x63d   : > { %3179 = vrcp.f32 %v1816_v23 }
 0x646   : > { %v3178_v25 = vpop.eup %3177 }
 0x647   : > { %v1819_v27 = vmul.f32 %v3178_v25, %v1802_v24  ;;  %v3180_v32 = vpop.eup %3179 }
 0x648   : > { %v1822_v33 = vsub.f32 1.0, %v3180_v32  ;;  %v1824_v38 = vmul.f32 %v3180_v32, %v1585_v7  ;;  %v2500_v7 = vld [vmem:[%s3478_s13 + $0xb0] sm:$0xff] }
 0x649   : > { %v1820_v30 = vadd.f32 %v2483_v26, %v1819_v27 }
 0x64b   : > { %3181 = vtanh.f32 %v1820_v30 }
 0x655   : > { %v3182_v34 = vpop.eup %3181 }
 0x656   : > { %v1823_v35 = vmul.f32 %v3182_v34, %v1822_v33 }
 0x658   : > { %v1825_v39 = vadd.f32 %v1824_v38, %v1823_v35 }
 0x65a   : > { %2489 = vst.msk [vmem:[%s3480_s14 + $0x28] sm:$0xff] %vm386_vm2, %v1825_v39  ;;  %2842 = vmatmul.mubr.msk.f32.vlgmr.msra.gmra.mrb[18].mxu0 %vm386_vm2, %v1825_v39  ;;  %2853 = vmatmul.mubr.msk.f32.vlgmr.msra.gmra.mrb[18].mxu1 %vm386_vm2, %v1825_v39 }
 0x65b   : > { %3021 = vmatpush3.bf16.msra.mxu0 %v3532_v42  ;;  %2863 = vmatprep.mubr.msk.f32.mxu0 %vm3300_vm1, %v3301_v31 }
 0x65c   : > { %3022 = vmatprep.subr.bf16.mxu0 %v3299_v28  ;;  %3027 = vmatpush3.bf16.msra.mxu1 %v3493_v29  ;;  %v2490_v29 = vld [vmem:[%s3478_s13 + $0x90] sm:$0xff]  ;;  %s3756_s13 = scalar_lea.hbm %s3819_s4, %s2511_s11 }
 0x65d   : > { %3028 = vmatprep.subr.bf16.mxu1 %v3299_v28  ;;  %2874 = vmatprep.mubr.msk.f32.mxu1 %vm3300_vm1, %v3301_v31 }
 0x65f   : > { %3024 = vmatpush3.bf16.msra.mxu0 %v3545_v45 }
 0x660   : > { %3031 = vmatprep.subr.bf16.mxu0 %v3299_v28  ;;  %3030 = vmatpush3.bf16.msra.mxu1 %v3516_v36 }
 0x661   : > { %3037 = vmatprep.subr.bf16.mxu1 %v3299_v28 }
 0x662   : > { %2864 = vmatmul.mubr.msk.f32.vlgmr.msra.gmra.mrb[20].mxu0 %vm386_vm2, %v1825_v39 }
 0x663   : > { %3033 = vmatpush3.bf16.msra.mxu0 %v3518_v37  ;;  %2885 = vmatprep.mubr.msk.f32.mxu0 %vm3300_vm1, %v3301_v31 }
 0x664   : > { %3034 = vmatprep.subr.bf16.mxu0 %v3299_v28 }
 0x667   : > { %3036 = vmatpush3.bf16.msra.mxu0 %v3528_v40 }
 0x72d   : > { %v1901_v41 = vpop.f32.mrb[18].mxu0  ;;  %v1971_v43 = vpop.f32.mrb[18].mxu1 }
 0x72e   : > { %v2045_v44 = vadd.f32 %v2490_v29, %v1901_v41  ;;  %v2843_v47 = vpop.f32.mrb[19].mxu0  ;;  %v2854_v36 = vpop.f32.mrb[19].mxu1  ;;  %v2052_v49 = vadd.f32 %v2491_v46, %v1971_v43 }
 0x730   : > { %v2496_v48 = vmul.f32 -1.442695, %v2045_v44  ;;  %v2497_v50 = vmul.f32 -1.442695, %v2052_v49 }
 0x732   : > { %3183 = vpow2.f32 %v2496_v48 }
 0x733   : > { %3185 = vpow2.f32 %v2497_v50 }
 0x735   : > { %v2041_v37 = vpop.f32.mrb[20].mxu0 }
 0x736   : > { %v2865_v51 = vpop.f32.mrb[21].mxu0  ;;  %v2042_v55 = vadd.f32 %v3571_v61, %v2041_v37 }
 0x73c   : > { %v3184_v52 = vpop.eup %3183 }
 0x73d   : > { %v2049_v53 = vadd.f32 1.0, %v3184_v52  ;;  %v3186_v40 = vpop.eup %3185 }
 0x73e   : > { %v2056_v54 = vadd.f32 1.0, %v3186_v40 }
 0x73f   : > { %3187 = vrcp.f32 %v2049_v53 }
 0x740   : > { %3189 = vrcp.f32 %v2056_v54 }
 0x749   : > { %v3188_v56 = vpop.eup %3187 }
 0x74a   : > { %v2059_v58 = vmul.f32 %v3188_v56, %v2042_v55  ;;  %v3190_v60 = vpop.eup %3189 }
 0x74b   : > { %v2062_v62 = vsub.f32 1.0, %v3190_v60  ;;  %v2064_v1 = vmul.f32 %v3190_v60, %v1825_v39 }
 0x74c   : > { %v2060_v59 = vadd.f32 %v2492_v57, %v2059_v58 }
 0x74e   : > { %3191 = vtanh.f32 %v2060_v59 }
 0x758   : > { %v3192_v63 = vpop.eup %3191 }
 0x759   : > { %v2063_v0 = vmul.f32 %v3192_v63, %v2062_v62 }
 0x75b   : > { %v2065_v2 = vadd.f32 %v2064_v1, %v2063_v0 }
 0x75d   : > { %2498 = vst.msk [vmem:[%s3480_s14 + $0x30] sm:$0xff] %vm386_vm2, %v2065_v2  ;;  %2875 = vmatmul.mubr.msk.f32.vlgmr.msra.gmra.mrb[20].mxu1 %vm386_vm2, %v2065_v2  ;;  %2886 = vmatmul.mubr.msk.f32.vlgmr.msra.gmra.mrb[22].mxu0 %vm386_vm2, %v2065_v2 }
 0x75e   : > { %3039 = vmatpush3.bf16.msra.mxu1 %v3532_v42  ;;  %2896 = vmatprep.mubr.msk.f32.mxu1 %vm3300_vm1, %v3301_v31 }
 0x75f   : > { %3040 = vmatprep.subr.bf16.mxu1 %v3299_v28 }
 0x762   : > { %3042 = vmatpush3.bf16.msra.mxu1 %v3545_v45 }
 0x765   : > { %2897 = vmatmul.mubr.msk.f32.vlgmr.msra.gmra.mrb[22].mxu1 %vm386_vm2, %v2065_v2 }
 0x830   : > { %v2141_v4 = vpop.f32.mrb[20].mxu1  ;;  %v2211_v5 = vpop.f32.mrb[22].mxu0 }
 0x831   : > { %v2285_v6 = vadd.f32 %v2499_v3, %v2141_v4  ;;  %v2876_v8 = vpop.f32.mrb[21].mxu1  ;;  %v2887_v9 = vpop.f32.mrb[23].mxu0  ;;  %v2292_v11 = vadd.f32 %v2500_v7, %v2211_v5 }
 0x833   : > { %v2505_v10 = vmul.f32 -1.442695, %v2285_v6  ;;  %v2506_v42 = vmul.f32 -1.442695, %v2292_v11 }
 0x835   : > { %3193 = vpow2.f32 %v2505_v10 }
 0x836   : > { %3195 = vpow2.f32 %v2506_v42 }
 0x838   : > { %v2281_v31 = vpop.f32.mrb[22].mxu1 }
 0x839   : > { %v2898_v28 = vpop.f32.mrb[23].mxu1  ;;  %v2282_v15 = vadd.f32 %v3571_v61, %v2281_v31 }
 0x83f   : > { %v3194_v45 = vpop.eup %3193 }
 0x840   : > { %v2289_v12 = vadd.f32 1.0, %v3194_v45  ;;  %v3196_v13 = vpop.eup %3195 }
 0x841   : > { %v2296_v14 = vadd.f32 1.0, %v3196_v13 }
 0x842   : > { %3197 = vrcp.f32 %v2289_v12 }
 0x843   : > { %3199 = vrcp.f32 %v2296_v14 }
 0x84c   : > { %v3198_v16 = vpop.eup %3197 }
 0x84d   : > { %v2299_v18 = vmul.f32 %v3198_v16, %v2282_v15  ;;  %v3200_v20 = vpop.eup %3199 }
 0x84e   : > { %v2302_v21 = vsub.f32 1.0, %v3200_v20  ;;  %v2304_v23 = vmul.f32 %v3200_v20, %v2065_v2 }
 0x84f   : > { %v2300_v19 = vadd.f32 %v2501_v17, %v2299_v18 }
 0x851   : > { %3201 = vtanh.f32 %v2300_v19 }
 0x85b   : > { %v3202_v22 = vpop.eup %3201 }
 0x85c   : > { %v2303_v24 = vmul.f32 %v3202_v22, %v2302_v21 }
 0x85e   : > { %v2305_v61 = vadd.f32 %v2304_v23, %v2303_v24 }
 0x860   : > { %2507 = vst.msk [vmem:[%s3480_s14 + $0x38] sm:$0xff] %vm386_vm2, %v2305_v61  ;;  %2308 = vst.msk [vmem:[#allocation2] sm:$0xff] %vm386_vm2, %v2305_v61 }
 0x861   : > { %3216 = shalt.err (!%p3213_p11)
}
 0x862   : > { %s3217_s14 = scalar_lea.hbm %s3756_s13, 1024  ;;  %s3221_s10 = scalar_lea.hbm %s3819_s4, 4096 }
 0x863   : > { %p3218_p12 = scmp.ne.s32.totalorder %s3756_s13, %s3217_s14  ;;  %p3222_p1 = scmp.lt.u32.totalorder %s3756_s13, %s3819_s4 }
 0x864   : > { %p3223_p2 = scmp.lt.u32.totalorder %s3221_s10, %s3217_s14  ;;  %p3225_p4 = scmp.lt.u32.totalorder %s3217_s14, %s3756_s13 }
 0x865   : > { %p3219_p13 = pnand %p3218_p12, %p3391_p8 }
 0x866   : > { %p3224_p3 = por %p3223_p2, %p3222_p1 }
 0x867   : > { %p3220_p0 = pneg %p3219_p13 }
 0x868   : > { %p3226_p5 = por %p3225_p4, %p3224_p3 }
 0x86a   : > { %p3227_p6 = pnand %p3226_p5, %p3220_p0 }
 0x86c   : > { %3230 = shalt.err (!%p3227_p6)
}
 0x86d   : > { %s3303_s24 = smov 128   ;;  %s3304_s19 = smov 256  }
 0x86e   : > { %s3305_s27 = smov 8  }
 0x86f   : > { %3046 = dma.vmem_to_hbm [thread:$0]  (%p3391_p8), %s3758_s12, 1024, %s3756_s13, %s2310_s18, %s3303_s24, %s3304_s19, %s3305_s27  }
 0x870 PF: > { %p3052_p7 = scmp.ge.s32.totalorder %s3297_s22, 2  ;;  %s2340_s7 = sand.u32 1, %s3269_s15  }
 0x871   : > { %s2341_s9 = scalar_lea.sflag [#allocation5], %s2340_s7 }
 0x872   : > { %p3049_p10 = pnand %p3052_p7, %p3395_p9 }
 0x874   : > { %3264 = dma.done.wait (!%p3049_p10), %s2341_s9, 1024  }
 0x875   : > { %3266 = vsyncadd (!%p3049_p10), %s2341_s9, 4294966272  ;;  %s17_s22 = sadd.s32 1, %s3297_s22   ;;  %s3823_s15 = smov %s3273_s16 }
 0x876   : > { %p14_p11 = scmp.ge.s32.totalorder %s17_s22, 6   ;;  %s3824_s16 = smov %s3277_s17 }
 0x877   : > { %s3825_s17 = smov %s3403_s8  ;;  %s3826_s18 = smov %s3289_s20 }
 0x878   : > { %s3827_s19 = smov %s3293_s21  ;;  %s3828_s20 = smov %s3831_s25 }
 0x879   : > { %s3829_s21 = smov %s3835_s26  ;;  %16 = sbr.rel (!%p14_p11) target bundleno = 5 (0x5), region = 137 }
 0x880   :  { %2346 = vsyncpa [#allocation5], 1 }
 0x881   :  { %2348 = vsyncpa [#allocation5 + $0x1], 1 }

</bundles_post_ra>
